<compile_context>
chip_gen: v6e
topology: v6e:2x2x1
jax: 0.10.0
libtpu: 0.0.40
codegen_flags: <defaults>
</compile_context>

<pallas_src>
import functools
import math

import jax
import jax.numpy as jnp
from jax import lax
from jax.experimental import pallas as pl
from jax.experimental.pallas import tpu as pltpu

LN_EPS = 1e-5  # layer_norm_epsilon


# ----------------------------- in-kernel helpers -----------------------------

def _layernorm(x, w, b):
    mu = jnp.mean(x, axis=-1, keepdims=True)
    var = jnp.mean(jnp.square(x - mu), axis=-1, keepdims=True)
    return (x - mu) * lax.rsqrt(var + LN_EPS) * w + b


def _gelu_new(x):
    # GPT-2 "gelu_new": 0.5*x*(1+tanh(sqrt(2/pi)*(x+0.044715*x^3)))
    return 0.5 * x * (1.0 + jnp.tanh(
        math.sqrt(2.0 / math.pi) * (x + 0.044715 * x * x * x)))


# ------------------------------ hardware helpers -------------------------------

def _tpu_vmem_capacity():
    try:
        cap = int(getattr(pltpu.get_tpu_info(), "vmem_capacity_bytes"))
        if cap > 0:
            return cap
    except Exception:
        pass
    return 128 << 20  # v5e / v6e default


def _vmem_cap_limit(vmem_cap):
    # v7x (64 MiB/TC): leave headroom for pipeline buffers / internal scratch.
    if vmem_cap <= (64 << 20):
        return 48 << 20
    return min(100 << 20, vmem_cap)


# ------------------------------ tiling helpers --------------------------------

def _attn_kv_tile(T):
    """KV tile for the in-kernel online-softmax attention (== T when small)."""
    if T <= 512:
        return T
    best = None
    for c in range(128, 513, 128):
        if T % c == 0:
            best = c
    return best if best is not None else T


def _pick_batch_block(B, T, E, n_head, vmem_cap):
    """Largest batch-block divisor of B whose real VMEM footprint (scores, qkv,
    4E MLP intermediate, double-buffered weights and act tiles) fits the budget.
    Prefers >=2 grid steps so multi-core chips can shard the batch axis."""
    kv_tile = _attn_kv_tile(T)
    hd = E // n_head
    del hd
    param_bytes = (E * 3 * E + E * E + 4 * E * E + 4 * E * E) * 2  # bf16 matmul weights

    def need(bb):
        R = bb * T
        g = bb * n_head
        act_io = 2 * 2 * (bb * T * E * 2)                # in+out tiles, double-buffered
        weights = 2 * param_bytes                        # default double-buffering
        inter = R * (3 * E + 4 * E + 2 * E) * 4          # qkv + mlp mid + residual (f32)
        qkv_bf = 3 * R * E * 2                           # q/k/v bf16
        scores = 2 * g * T * kv_tile * 4                 # scores + probs (f32)
        return act_io + weights + inter + qkv_bf + scores

    budget = int(0.55 * vmem_cap)
    divs = [d for d in range(1, B + 1) if B % d == 0]
    feas = [d for d in divs if need(d) <= budget] or [1]
    half = [d for d in feas if d <= max(B // 2, 1)]
    cand = half if (B >= 2 and half) else feas
    for d in cand:                 # smallest block that still feeds the MXU >=256 rows
        if d * T >= 256:
            return d
    return cand[-1]


def _pick_vocab_tile(V_pad, vmem_cap):
    """Largest multiple-of-128 divisor of the padded vocab <= a per-generation target."""
    target = 2048 if vmem_cap > (64 << 20) else 1024
    best = 128
    for c in range(128, min(V_pad, target) + 1, 128):
        if V_pad % c == 0:
            best = c
    return best


# ------------------------- fused GPT-2 block kernel ---------------------------
# One kernel = LN1 -> QKV proj -> causal multi-head attention (head-batched,
# KV-tiled online softmax) -> out proj -> residual -> LN2 -> MLP -> residual.

def _block_kernel(n_head, kv_tile,
                  x_ref, ln1w, ln1b, wqkv, bqkv, wproj, bproj,
                  ln2w, ln2b, wfc, bfc, wmp, bmp, o_ref):
    Bb, T, E = x_ref.shape
    R = Bb * T
    H = n_head
    hd = E // H
    G = Bb * H
    scale = 1.0 / math.sqrt(hd)
    bf16 = jnp.bfloat16

    x = x_ref[...].reshape(R, E).astype(jnp.float32)                 # residual, f32

    # ---- attention ----
    h1 = _layernorm(x, ln1w[...], ln1b[...])
    qkv = jnp.dot(h1.astype(bf16), wqkv[...],
                  preferred_element_type=jnp.float32) + bqkv[...]    # (R, 3E) f32

    # Head split: H full-height lane slices + leading-axis concat -> (G, T, hd),
    # G ordered (batch, head).  No per-(batch,head) copies, no sublane transposes.
    def split_heads(base):
        parts = [qkv[:, base + h * hd:base + (h + 1) * hd].reshape(Bb, 1, T, hd)
                 for h in range(H)]
        return jnp.concatenate(parts, axis=1).reshape(G, T, hd).astype(bf16)

    q = split_heads(0)
    k = split_heads(E)
    v = split_heads(2 * E)

    # KV-tiled online-softmax attention.  kv_tile == T for short sequences (single
    # dense step); for long T this bounds VMEM to O(G * T * kv_tile).
    n_kv = T // kv_tile
    row = lax.broadcasted_iota(jnp.int32, (T, kv_tile), 0)
    col0 = lax.broadcasted_iota(jnp.int32, (T, kv_tile), 1)
    m_run = jnp.full((G, T, 1), -1e30, jnp.float32)
    l_run = jnp.zeros((G, T, 1), jnp.float32)
    acc = jnp.zeros((G, T, hd), jnp.float32)
    for i in range(n_kv):
        k_t = k[:, i * kv_tile:(i + 1) * kv_tile, :]
        v_t = v[:, i * kv_tile:(i + 1) * kv_tile, :]
        s = jnp.einsum('gtd,gsd->gts', q, k_t,
                       preferred_element_type=jnp.float32) * scale    # (G,T,kv) f32
        s = jnp.where((col0 + i * kv_tile) <= row, s, jnp.float32(-1e4))  # HF mask value
        m_new = jnp.maximum(m_run, jnp.max(s, axis=-1, keepdims=True))
        alpha = jnp.exp(m_run - m_new)
        p = jnp.exp(s - m_new)
        l_run = alpha * l_run + jnp.sum(p, axis=-1, keepdims=True)
        acc = alpha * acc + jnp.einsum('gts,gsd->gtd', p.astype(bf16), v_t,
                                       preferred_element_type=jnp.float32)
        m_run = m_new
    ctx = acc * pl.reciprocal(l_run, approx=True)                     # (G, T, hd) f32

    # Head merge: H lane concats back to (R, E), then ONE full-K out-projection
    # (keeps the MXU contraction at K=E instead of H small K=hd matmuls).
    ctx4 = ctx.reshape(Bb, H, T, hd)
    attn_rows = jnp.concatenate([ctx4[:, h].reshape(R, hd) for h in range(H)],
                                axis=-1)                              # (R, E) f32
    attn = jnp.dot(attn_rows.astype(bf16), wproj[...],
                   preferred_element_type=jnp.float32) + bproj[...]
    x = x + attn

    # ---- MLP ----
    h2 = _layernorm(x, ln2w[...], ln2b[...])
    mlp = jnp.dot(h2.astype(bf16), wfc[...],
                  preferred_element_type=jnp.float32) + bfc[...]
    mlp = _gelu_new(mlp)                                              # f32 EUP tanh
    mlp = jnp.dot(mlp.astype(bf16), wmp[...],
                  preferred_element_type=jnp.float32) + bmp[...]

    o_ref[...] = (x + mlp).reshape(Bb, T, E).astype(o_ref.dtype)


def gpt2_block(x, layer_params, n_head, block_b, vmem_cap):
    """x: (B, T, E) bf16; layer_params: ordered tuple of 2-D param arrays."""
    B, T, E = x.shape
    nb = B // block_b
    kv_tile = _attn_kv_tile(T)
    R = block_b * T

    in_specs = [pl.BlockSpec((block_b, T, E), lambda b: (b, 0, 0))]
    for p in layer_params:
        in_specs.append(pl.BlockSpec(p.shape, lambda b: (0, 0)))
    # TODO(synk): pipeline_mode=pl.Buffered(1) on the resident weight specs would free
    # one weight copy of VMEM; left at default double-buffering for lowering safety.

    param_bytes = sum(int(p.size) * p.dtype.itemsize for p in layer_params)
    act_tile_bytes = block_b * T * E * 2
    live = (R * (3 * E + 4 * E + 2 * E) * 4
            + 3 * R * E * 2
            + 2 * block_b * n_head * T * kv_tile * 4)
    vmem_need = 2 * param_bytes + 4 * act_tile_bytes + live
    vmem_limit = int(min(_vmem_cap_limit(vmem_cap),
                         max(32 << 20, int(1.25 * vmem_need))))

    flops = 24 * B * T * E * E + 4 * B * T * T * E
    transc = B * T * (4 * E + n_head * T)
    bytes_acc = 4 * B * T * E + param_bytes        # bf16 in+out, weights counted once

    return pl.pallas_call(
        functools.partial(_block_kernel, n_head, kv_tile),
        out_shape=jax.ShapeDtypeStruct((B, T, E), jnp.bfloat16),
        grid=(nb,),
        in_specs=in_specs,
        out_specs=pl.BlockSpec((block_b, T, E), lambda b: (b, 0, 0)),
        compiler_params=pltpu.CompilerParams(
            dimension_semantics=("parallel",),
            vmem_limit_bytes=vmem_limit),
        cost_estimate=pl.CostEstimate(flops=int(flops),
                                      transcendentals=int(transc),
                                      bytes_accessed=int(bytes_acc)),
    )(x, *layer_params)


# --------- fused final-LayerNorm + tied LM head + CE + argmax kernel -----------
# grid = (batch_blocks, vocab_tiles).  The vocab axis ("arbitrary", innermost)
# streams (E, TV) slices of the pre-transposed tied embedding; loss terms (online
# logsumexp + picked logit) and argmax accumulate in VMEM scratch, so logits never
# have to be re-read from HBM (and are optionally never written at all).

def _lnf_head_ce_kernel(V_real, with_logits, x_ref, gw, gb, w_ref, tgt_ref, *rest):
    if with_logits:
        (logit_ref, nll_ref, arg_ref,
         h_sc, m_sc, s_sc, pick_sc, av_sc, ai_sc) = rest
    else:
        logit_ref = None
        (nll_ref, arg_ref,
         h_sc, m_sc, s_sc, pick_sc, av_sc, ai_sc) = rest

    j = pl.program_id(1)
    Bb, T, E = x_ref.shape
    R = Bb * T
    TV = w_ref.shape[1]

    @pl.when(j == 0)
    def _init():
        x = x_ref[...].reshape(R, E).astype(jnp.float32)
        h_sc[...] = _layernorm(x, gw[...], gb[...]).astype(jnp.bfloat16)
        m_sc[...] = jnp.full((R, 1), -1e30, jnp.float32)
        s_sc[...] = jnp.zeros((R, 1), jnp.float32)
        pick_sc[...] = jnp.zeros((R, 1), jnp.float32)
        av_sc[...] = jnp.full((R, 1), -1e30, jnp.float32)
        ai_sc[...] = jnp.zeros((R, 1), jnp.int32)

    # logits tile: ln_f(x) @ wte_tile  (weight pre-transposed host-side: no vxpose)
    logits = jnp.dot(h_sc[...], w_ref[...],
                     preferred_element_type=jnp.float32)              # (R, TV) f32

    col = lax.broadcasted_iota(jnp.int32, (R, TV), 1) + j * TV
    valid = col < V_real                                              # mask vocab padding
    logits_m = jnp.where(valid, logits, jnp.float32(-1e30))

    if with_logits:
        logit_ref[...] = logits.reshape(Bb, T, TV).astype(logit_ref.dtype)

    tgt = tgt_ref[...].reshape(R, 1)

    # picked (target) logit — the label falls in exactly one vocab tile
    pick_sc[...] += jnp.sum(jnp.where(col == tgt, logits, 0.0),
                            axis=-1, keepdims=True)

    # online logsumexp over vocab tiles (padded columns excluded)
    tile_max = jnp.max(logits_m, axis=-1, keepdims=True)
    m_prev = m_sc[...]
    m_new = jnp.maximum(m_prev, tile_max)
    s_sc[...] = (s_sc[...] * jnp.exp(m_prev - m_new)
                 + jnp.sum(jnp.where(valid, jnp.exp(logits_m - m_new), 0.0),
                           axis=-1, keepdims=True))
    m_sc[...] = m_new

    # running argmax (first occurrence wins on ties)
    tile_arg = jnp.min(jnp.where(logits_m == tile_max, col, jnp.int32(2 ** 31 - 1)),
                       axis=-1, keepdims=True)
    better = tile_max > av_sc[...]
    av_sc[...] = jnp.where(better, tile_max, av_sc[...])
    ai_sc[...] = jnp.where(better, tile_arg, ai_sc[...])

    @pl.when(j == pl.num_programs(1) - 1)
    def _final():
        nll = (m_sc[...] + jnp.log(s_sc[...])) - pick_sc[...]
        nll_ref[...] = nll.reshape(1, Bb, T)
        arg_ref[...] = ai_sc[...].reshape(1, Bb, T)


def lnf_lm_head_fused(x, gw, gb, wte, targets, block_b, vmem_cap,
                      with_logits=True, logits_dtype=jnp.bfloat16):
    """ln_f + tied lm_head + fused per-token NLL + per-token argmax.

    targets: (B, T) int32, already shifted (targets[t] labels logits[t]), -1 = ignore.
    Returns (logits (B,T,V) or None, nll (B,T) f32, argmax (B,T) int32).
    """
    B, T, E = x.shape
    V = wte.shape[0]
    V_pad = ((V + 127) // 128) * 128
    w = wte if V_pad == V else jnp.pad(wte, ((0, V_pad - V), (0, 0)))
    w_t = jnp.transpose(w).astype(jnp.bfloat16)          # (E, V_pad), done once per call
    tv = _pick_vocab_tile(V_pad, vmem_cap)
    nb = B // block_b
    nv = V_pad // tv
    R = block_b * T
    tgt = targets.astype(jnp.int32).reshape(nb, block_b, T)

    out_shape = []
    out_specs = []
    if with_logits:
        out_shape.append(jax.ShapeDtypeStruct((B, T, V_pad), logits_dtype))
        out_specs.append(pl.BlockSpec((block_b, T, tv), lambda b, j: (b, 0, j)))
    out_shape.append(jax.ShapeDtypeStruct((nb, block_b, T), jnp.float32))
    out_specs.append(pl.BlockSpec((1, block_b, T), lambda b, j: (b, 0, 0)))
    out_shape.append(jax.ShapeDtypeStruct((nb, block_b, T), jnp.int32))
    out_specs.append(pl.BlockSpec((1, block_b, T), lambda b, j: (b, 0, 0)))

    in_specs = [
        pl.BlockSpec((block_b, T, E), lambda b, j: (b, 0, 0)),
        pl.BlockSpec((1, E), lambda b, j: (0, 0)),
        pl.BlockSpec((1, E), lambda b, j: (0, 0)),
        pl.BlockSpec((E, tv), lambda b, j: (0, j)),
        pl.BlockSpec((1, block_b, T), lambda b, j: (b, 0, 0)),
    ]
    scratch = [
        pltpu.VMEM((R, E), jnp.bfloat16),   # ln_f(x), reused across vocab tiles
        pltpu.VMEM((R, 1), jnp.float32),    # running max (logsumexp)
        pltpu.VMEM((R, 1), jnp.float32),    # running sum-exp
        pltpu.VMEM((R, 1), jnp.float32),    # picked target logit
        pltpu.VMEM((R, 1), jnp.float32),    # running argmax value
        pltpu.VMEM((R, 1), jnp.int32),      # running argmax index
    ]

    logit_bytes = jnp.dtype(logits_dtype).itemsize if with_logits else 0
    vmem_need = (4 * block_b * T * E * 2 + 4 * E * tv * 2
                 + 2 * block_b * T * tv * logit_bytes
                 + R * E * 2 + 6 * R * 4 + 2 * R * tv * 4)
    vmem_limit = int(min(_vmem_cap_limit(vmem_cap),
                         max(32 << 20, int(1.25 * vmem_need))))

    w_bytes = E * V_pad * 2
    flops = 2 * B * T * E * V_pad
    transc = B * T * V_pad
    bytes_acc = (B * T * E * 2 + w_bytes + B * T * V_pad * logit_bytes
                 + 2 * B * T * 8)

    outs = pl.pallas_call(
        functools.partial(_lnf_head_ce_kernel, V, with_logits),
        out_shape=tuple(out_shape),
        grid=(nb, nv),
        in_specs=in_specs,
        out_specs=tuple(out_specs),
        scratch_shapes=scratch,
        compiler_params=pltpu.CompilerParams(
            dimension_semantics=("parallel", "arbitrary"),
            vmem_limit_bytes=vmem_limit),
        cost_estimate=pl.CostEstimate(flops=int(flops),
                                      transcendentals=int(transc),
                                      bytes_accessed=int(bytes_acc)),
    )(x, gw, gb, w_t, tgt)

    if with_logits:
        logits_pad, nll, amax = outs
        logits = logits_pad[:, :, :V]
    else:
        nll, amax = outs
        logits = None
    return logits, nll.reshape(B, T), amax.reshape(B, T)


# -------------------------------- parameters ----------------------------------
# Matmul weights stored in bf16 (halves HBM/VMEM traffic, feeds the MXU natively);
# LayerNorm params and biases stay f32.

def _init_block(key, n_embd, std):
    ks = jax.random.split(key, 4)
    E = n_embd
    return (
        jnp.ones((1, E), jnp.float32),                                        # ln1 w
        jnp.zeros((1, E), jnp.float32),                                       # ln1 b
        (jax.random.normal(ks[0], (E, 3 * E)) * std).astype(jnp.bfloat16),    # c_attn w
        jnp.zeros((1, 3 * E), jnp.float32),                                   # c_attn b
        (jax.random.normal(ks[1], (E, E)) * std).astype(jnp.bfloat16),        # c_proj w
        jnp.zeros((1, E), jnp.float32),                                       # c_proj b
        jnp.ones((1, E), jnp.float32),                                        # ln2 w
        jnp.zeros((1, E), jnp.float32),                                       # ln2 b
        (jax.random.normal(ks[2], (E, 4 * E)) * std).astype(jnp.bfloat16),    # mlp fc w
        jnp.zeros((1, 4 * E), jnp.float32),                                   # mlp fc b
        (jax.random.normal(ks[3], (4 * E, E)) * std).astype(jnp.bfloat16),    # mlp proj w
        jnp.zeros((1, E), jnp.float32),                                       # mlp proj b
    )


def init_transformer(key, vocab, n_pos, extra_rows, n_embd, n_layer, std=0.02):
    keys = jax.random.split(key, n_layer + 3)
    return {
        "wte": (jax.random.normal(keys[0], (vocab, n_embd)) * std).astype(jnp.bfloat16),
        "wpe": (jax.random.normal(keys[1], (n_pos, n_embd)) * std).astype(jnp.bfloat16),
        "we3": (jax.random.normal(keys[2], (extra_rows, n_embd)) * std).astype(jnp.bfloat16),
        "blocks": [_init_block(keys[3 + i], n_embd, std) for i in range(n_layer)],
        "lnf_w": jnp.ones((1, n_embd), jnp.float32),
        "lnf_b": jnp.zeros((1, n_embd), jnp.float32),
    }


# --------------------------------- glue / model --------------------------------

def transformer_stack(params, input_ids, position_ids, extra_ids, n_head,
                      block_b, vmem_cap):
    # embedding gather (glue); dropout treated as identity (see TODO at top)
    h = (params["wte"][input_ids].astype(jnp.float32)
         + params["wpe"][position_ids].astype(jnp.float32)
         + params["we3"][extra_ids].astype(jnp.float32)).astype(jnp.bfloat16)
    for layer in params["blocks"]:
        h = gpt2_block(h, layer, n_head, block_b, vmem_cap)
    return h


def masked_mean(nll, targets, ignore_index=-1):
    valid = targets != ignore_index
    return jnp.sum(jnp.where(valid, nll, 0.0)) / jnp.maximum(jnp.sum(valid), 1)


def gpt2_lm_head_forward(params, params_time, cfg,
                         input_ids, labels, time_stamp, cluster):
    """Train-state forward of GPT2LMHeadModel."""
    B, T = input_ids.shape
    E = cfg["n_embd"]
    pos = jnp.broadcast_to(jnp.arange(T, dtype=jnp.int32)[None, :], (B, T))
    vmem_cap = _tpu_vmem_capacity()
    block_b = _pick_batch_block(B, T, E, cfg["n_head"], vmem_cap)

    def shift_targets(lbl):
        # target[t] = label for logits at position t (i.e. labels[t+1]); -1 = ignore
        return jnp.concatenate(
            [lbl[:, 1:].astype(jnp.int32), jnp.full((B, 1), -1, jnp.int32)], axis=1)

    # ---- TimerGPT2LMHeadModel (input_ids=time_stamp, labels=time_stamp) ----
    h_t = transformer_stack(params_time, time_stamp, pos, cluster,
                            cfg["n_head"], block_b, vmem_cap)
    tgt_t = shift_targets(time_stamp)
    # timer logits are never consumed downstream -> skip their HBM writeback entirely
    _, time_nll, time_amax = lnf_lm_head_fused(
        h_t, params_time["lnf_w"], params_time["lnf_b"], params_time["wte"],
        tgt_t, block_b, vmem_cap, with_logits=False)
    time_loss = masked_mean(time_nll, tgt_t)

    # ---- time_id from argmax of shifted timer logits ----
    shift_argmax = time_amax[:, :-1].reshape(-1).astype(jnp.int32)
    time_id = jnp.concatenate([
        jnp.zeros((1,), jnp.int32),
        time_stamp[0, :1].astype(jnp.int32),
        shift_argmax,
    ])[:T]
    time_id = jnp.clip(time_id, 0, cfg["n_timestamp"] - 1)
    time_id = jnp.broadcast_to(time_id[None, :], (B, T))

    # ---- main GPT2Model ----
    h = transformer_stack(params, input_ids, pos, time_id, cfg["n_head"],
                          block_b, vmem_cap)
    tgt = shift_targets(labels)
    lm_logits, lm_nll, _ = lnf_lm_head_fused(
        h, params["lnf_w"], params["lnf_b"], params["wte"], tgt,
        block_b, vmem_cap, with_logits=True, logits_dtype=jnp.bfloat16)
    loss = masked_mean(lm_nll, tgt)

    time_model_loss = time_loss * 6.0
    all_loss = loss + time_model_loss
    return all_loss, lm_logits, loss, time_model_loss, time_id


# ------------------------------------ main --------------------------------------

if __name__ == "__main__":
    # small config (config / config_time share sizes here)
    cfg = dict(vocab_size=64, n_positions=16, n_embd=32, n_layer=2, n_head=4,
               n_timestamp=64, n_cluster=8)
    B, T = 2, 8

    root = jax.random.PRNGKey(0)
    k_main, k_time, k_ids, k_ts, k_cl = jax.random.split(root, 5)

    params = init_transformer(k_main, cfg["vocab_size"], cfg["n_positions"],
                              cfg["n_timestamp"], cfg["n_embd"], cfg["n_layer"])
    params_time = init_transformer(k_time, cfg["vocab_size"], cfg["n_positions"],
                                   cfg["n_cluster"], cfg["n_embd"], cfg["n_layer"])

    input_ids = jax.random.randint(k_ids, (B, T), 0, cfg["vocab_size"], jnp.int32)
    time_stamp = jax.random.randint(k_ts, (B, T), 0, cfg["n_timestamp"], jnp.int32)
    cluster = jax.random.randint(k_cl, (B, T), 0, cfg["n_cluster"], jnp.int32)
    labels = input_ids

    fwd = jax.jit(lambda p, pt, ids, lab, ts, cl:
                  gpt2_lm_head_forward(p, pt, cfg, ids, lab, ts, cl))
    all_loss, lm_logits, loss, time_model_loss, time_id = fwd(
        params, params_time, input_ids, labels, time_stamp, cluster)

    jax.block_until_ready((all_loss, lm_logits, loss, time_model_loss, time_id))
    assert lm_logits.shape == (B, T, cfg["vocab_size"])
    assert time_id.shape == (B, T)
    assert jnp.isfinite(all_loss)
    print("KERNEL_OK")
</pallas_src>

<mosaic_0001>
module attributes {stable_mosaic.version = 11 : i64} {
  func.func @_lnf_head_ce_kernel(%arg0: i32, %arg1: i32, %arg2: memref<1x8x32xbf16, #tpu.memory_space<vmem>>, %arg3: memref<1x32xf32, #tpu.memory_space<vmem>>, %arg4: memref<1x32xf32, #tpu.memory_space<vmem>>, %arg5: memref<32x128xbf16, #tpu.memory_space<vmem>>, %arg6: memref<1x1x8xi32, #tpu.memory_space<vmem>>, %arg7: memref<1x1x8xf32, #tpu.memory_space<vmem>>, %arg8: memref<1x1x8xi32, #tpu.memory_space<vmem>>, %arg9: memref<8x32xbf16, #tpu.memory_space<vmem>>, %arg10: memref<8x1xf32, #tpu.memory_space<vmem>>, %arg11: memref<8x1xf32, #tpu.memory_space<vmem>>, %arg12: memref<8x1xf32, #tpu.memory_space<vmem>>, %arg13: memref<8x1xf32, #tpu.memory_space<vmem>>, %arg14: memref<8x1xi32, #tpu.memory_space<vmem>>) attributes {dimension_semantics = [#tpu.dimension_semantics<parallel>, #tpu.dimension_semantics<arbitrary>], iteration_bounds = array<i64: 2, 1>, scalar_prefetch = 0 : i64, scratch_operands = 6 : i64, tpu.core_type = #tpu.core_type<tc>, window_params = [{transform_indices = @transform_0, window_bounds = array<i64: 1, 8, 32>}, {pipeline_mode = #tpu.pipeline_mode<synchronous>, transform_indices = @transform_1, window_bounds = array<i64: 1, 32>}, {pipeline_mode = #tpu.pipeline_mode<synchronous>, transform_indices = @transform_2, window_bounds = array<i64: 1, 32>}, {transform_indices = @transform_3, window_bounds = array<i64: 32, 128>}, {transform_indices = @transform_4, window_bounds = array<i64: 1, 1, 8>}, {transform_indices = @transform_5, window_bounds = array<i64: 1, 1, 8>}, {transform_indices = @transform_6, window_bounds = array<i64: 1, 1, 8>}]} {
    %c0_i32 = arith.constant 0 : i32
    %0 = arith.cmpi eq, %arg1, %c0_i32 : i32
    %1 = arith.extui %0 : i1 to i32
    %c0_i32_0 = arith.constant 0 : i32
    %2 = arith.cmpi ne, %1, %c0_i32_0 : i32
    scf.if %2 {
      %c0_38 = arith.constant 0 : index
      %c0_39 = arith.constant 0 : index
      %c0_40 = arith.constant 0 : index
      %60 = vector.load %arg2[%c0_38, %c0_39, %c0_40] : memref<1x8x32xbf16, #tpu.memory_space<vmem>>, vector<1x8x32xbf16>
      %61 = vector.shape_cast %60 : vector<1x8x32xbf16> to vector<8x32xbf16>
      %62 = arith.extf %61 : vector<8x32xbf16> to vector<8x32xf32>
      %c0_41 = arith.constant 0 : index
      %c0_42 = arith.constant 0 : index
      %63 = vector.load %arg3[%c0_41, %c0_42] : memref<1x32xf32, #tpu.memory_space<vmem>>, vector<1x32xf32>
      %c0_43 = arith.constant 0 : index
      %c0_44 = arith.constant 0 : index
      %64 = vector.load %arg4[%c0_43, %c0_44] : memref<1x32xf32, #tpu.memory_space<vmem>>, vector<1x32xf32>
      %cst_45 = arith.constant dense<0.000000e+00> : vector<8xf32>
      %65 = vector.multi_reduction <add>, %62, %cst_45 [1] : vector<8x32xf32> to vector<8xf32>
      %66 = vector.shape_cast %65 : vector<8xf32> to vector<8x1xf32>
      %cst_46 = arith.constant 3.200000e+01 : f32
      %67 = vector.broadcast %cst_46 : f32 to vector<8x1xf32>
      %68 = arith.divf %66, %67 : vector<8x1xf32>
      %69 = vector.broadcast %68 : vector<8x1xf32> to vector<8x32xf32>
      %70 = arith.subf %62, %69 : vector<8x32xf32>
      %71 = arith.mulf %70, %70 : vector<8x32xf32>
      %cst_47 = arith.constant dense<0.000000e+00> : vector<8xf32>
      %72 = vector.multi_reduction <add>, %71, %cst_47 [1] : vector<8x32xf32> to vector<8xf32>
      %73 = vector.shape_cast %72 : vector<8xf32> to vector<8x1xf32>
      %cst_48 = arith.constant 3.200000e+01 : f32
      %74 = vector.broadcast %cst_48 : f32 to vector<8x1xf32>
      %75 = arith.divf %73, %74 : vector<8x1xf32>
      %76 = vector.broadcast %68 : vector<8x1xf32> to vector<8x32xf32>
      %77 = arith.subf %62, %76 : vector<8x32xf32>
      %cst_49 = arith.constant 9.99999974E-6 : f32
      %78 = vector.broadcast %cst_49 : f32 to vector<8x1xf32>
      %79 = arith.addf %75, %78 : vector<8x1xf32>
      %80 = math.rsqrt %79 : vector<8x1xf32>
      %81 = vector.broadcast %80 : vector<8x1xf32> to vector<8x32xf32>
      %82 = arith.mulf %77, %81 : vector<8x32xf32>
      %83 = vector.broadcast %63 : vector<1x32xf32> to vector<8x32xf32>
      %84 = arith.mulf %82, %83 : vector<8x32xf32>
      %85 = vector.broadcast %64 : vector<1x32xf32> to vector<8x32xf32>
      %86 = arith.addf %84, %85 : vector<8x32xf32>
      %87 = arith.truncf %86 : vector<8x32xf32> to vector<8x32xbf16>
      %c0_50 = arith.constant 0 : index
      %c0_51 = arith.constant 0 : index
      %88 = vector.load %arg9[%c0_50, %c0_51] : memref<8x32xbf16, #tpu.memory_space<vmem>>, vector<8x32xbf16>
      tpu.vector_store %arg9[%c0_50, %c0_51], %87 {strides = array<i32>} : memref<8x32xbf16, #tpu.memory_space<vmem>>, vector<8x32xbf16>,
      %cst_52 = arith.constant -1.000000e+30 : f32
      %89 = vector.broadcast %cst_52 : f32 to vector<8x1xf32>
      %c0_53 = arith.constant 0 : index
      %c0_54 = arith.constant 0 : index
      %90 = vector.load %arg10[%c0_53, %c0_54] : memref<8x1xf32, #tpu.memory_space<vmem>>, vector<8x1xf32>
      tpu.vector_store %arg10[%c0_53, %c0_54], %89 {strides = array<i32>} : memref<8x1xf32, #tpu.memory_space<vmem>>, vector<8x1xf32>,
      %cst_55 = arith.constant 0.000000e+00 : f32
      %91 = vector.broadcast %cst_55 : f32 to vector<8x1xf32>
      %c0_56 = arith.constant 0 : index
      %c0_57 = arith.constant 0 : index
      %92 = vector.load %arg11[%c0_56, %c0_57] : memref<8x1xf32, #tpu.memory_space<vmem>>, vector<8x1xf32>
      tpu.vector_store %arg11[%c0_56, %c0_57], %91 {strides = array<i32>} : memref<8x1xf32, #tpu.memory_space<vmem>>, vector<8x1xf32>,
      %cst_58 = arith.constant 0.000000e+00 : f32
      %93 = vector.broadcast %cst_58 : f32 to vector<8x1xf32>
      %c0_59 = arith.constant 0 : index
      %c0_60 = arith.constant 0 : index
      %94 = vector.load %arg12[%c0_59, %c0_60] : memref<8x1xf32, #tpu.memory_space<vmem>>, vector<8x1xf32>
      tpu.vector_store %arg12[%c0_59, %c0_60], %93 {strides = array<i32>} : memref<8x1xf32, #tpu.memory_space<vmem>>, vector<8x1xf32>,
      %cst_61 = arith.constant -1.000000e+30 : f32
      %95 = vector.broadcast %cst_61 : f32 to vector<8x1xf32>
      %c0_62 = arith.constant 0 : index
      %c0_63 = arith.constant 0 : index
      %96 = vector.load %arg13[%c0_62, %c0_63] : memref<8x1xf32, #tpu.memory_space<vmem>>, vector<8x1xf32>
      tpu.vector_store %arg13[%c0_62, %c0_63], %95 {strides = array<i32>} : memref<8x1xf32, #tpu.memory_space<vmem>>, vector<8x1xf32>,
      %c0_i32_64 = arith.constant 0 : i32
      %97 = vector.broadcast %c0_i32_64 : i32 to vector<8x1xi32>
      %c0_65 = arith.constant 0 : index
      %c0_66 = arith.constant 0 : index
      %98 = vector.load %arg14[%c0_65, %c0_66] : memref<8x1xi32, #tpu.memory_space<vmem>>, vector<8x1xi32>
      tpu.vector_store %arg14[%c0_65, %c0_66], %97 {strides = array<i32>} : memref<8x1xi32, #tpu.memory_space<vmem>>, vector<8x1xi32>,
    } else {
    }
    %c0 = arith.constant 0 : index
    %c0_1 = arith.constant 0 : index
    %3 = vector.load %arg9[%c0, %c0_1] : memref<8x32xbf16, #tpu.memory_space<vmem>>, vector<8x32xbf16>
    %c0_2 = arith.constant 0 : index
    %c0_3 = arith.constant 0 : index
    %4 = vector.load %arg5[%c0_2, %c0_3] : memref<32x128xbf16, #tpu.memory_space<vmem>>, vector<32x128xbf16>
    %cst = arith.constant dense<0.000000e+00> : vector<8x128xf32>
    %5 = tpu.matmul %3, %4, %cst {dimension_numbers = #tpu.dot_dimension_numbers<[1], [0], [0], [1], [0, 0, 1, 1], [], []>} : vector<8x32xbf16>, vector<32x128xbf16>, vector<8x128xf32> -> vector<8x128xf32>
    %6 = tpu.iota {dimensions = array<i32: 1>} : vector<8x128xi32>
    %c128_i32 = arith.constant 128 : i32
    %7 = arith.muli %arg1, %c128_i32 : i32
    %8 = vector.broadcast %7 : i32 to vector<8x128xi32>
    %9 = arith.addi %6, %8 : vector<8x128xi32>
    %c64_i32 = arith.constant 64 : i32
    %10 = vector.broadcast %c64_i32 : i32 to vector<8x128xi32>
    %11 = arith.cmpi slt, %9, %10 : vector<8x128xi32>
    %cst_4 = arith.constant -1.000000e+30 : f32
    %12 = vector.broadcast %cst_4 : f32 to vector<8x128xf32>
    %13 = arith.select %11, %5, %12 : vector<8x128xi1>, vector<8x128xf32>
    %c0_5 = arith.constant 0 : index
    %c0_6 = arith.constant 0 : index
    %c0_7 = arith.constant 0 : index
    %14 = vector.load %arg6[%c0_5, %c0_6, %c0_7] : memref<1x1x8xi32, #tpu.memory_space<vmem>>, vector<1x1x8xi32>
    %15 = vector.shape_cast %14 : vector<1x1x8xi32> to vector<8x1xi32>
    %c0_8 = arith.constant 0 : index
    %c0_9 = arith.constant 0 : index
    %16 = vector.load %arg12[%c0_8, %c0_9] : memref<8x1xf32, #tpu.memory_space<vmem>>, vector<8x1xf32>
    %17 = vector.broadcast %15 : vector<8x1xi32> to vector<8x128xi32>
    %18 = arith.cmpi eq, %9, %17 : vector<8x128xi32>
    %cst_10 = arith.constant 0.000000e+00 : f32
    %19 = vector.broadcast %cst_10 : f32 to vector<8x128xf32>
    %20 = arith.select %18, %5, %19 : vector<8x128xi1>, vector<8x128xf32>
    %cst_11 = arith.constant dense<0.000000e+00> : vector<8xf32>
    %21 = vector.multi_reduction <add>, %20, %cst_11 [1] : vector<8x128xf32> to vector<8xf32>
    %22 = vector.shape_cast %21 : vector<8xf32> to vector<8x1xf32>
    %23 = arith.addf %16, %22 : vector<8x1xf32>
    %c0_12 = arith.constant 0 : index
    %c0_13 = arith.constant 0 : index
    %24 = vector.load %arg12[%c0_12, %c0_13] : memref<8x1xf32, #tpu.memory_space<vmem>>, vector<8x1xf32>
    tpu.vector_store %arg12[%c0_12, %c0_13], %23 {strides = array<i32>} : memref<8x1xf32, #tpu.memory_space<vmem>>, vector<8x1xf32>,
    %cst_14 = arith.constant dense<0xFF800000> : vector<8xf32>
    %25 = vector.multi_reduction <maximumf>, %13, %cst_14 [1] : vector<8x128xf32> to vector<8xf32>
    %26 = vector.shape_cast %25 : vector<8xf32> to vector<8x1xf32>
    %c0_15 = arith.constant 0 : index
    %c0_16 = arith.constant 0 : index
    %27 = vector.load %arg10[%c0_15, %c0_16] : memref<8x1xf32, #tpu.memory_space<vmem>>, vector<8x1xf32>
    %28 = arith.maximumf %27, %26 : vector<8x1xf32>
    %c0_17 = arith.constant 0 : index
    %c0_18 = arith.constant 0 : index
    %29 = vector.load %arg11[%c0_17, %c0_18] : memref<8x1xf32, #tpu.memory_space<vmem>>, vector<8x1xf32>
    %30 = arith.subf %27, %28 : vector<8x1xf32>
    %31 = math.exp %30 : vector<8x1xf32>
    %32 = arith.mulf %29, %31 : vector<8x1xf32>
    %33 = vector.broadcast %28 : vector<8x1xf32> to vector<8x128xf32>
    %34 = arith.subf %13, %33 : vector<8x128xf32>
    %35 = math.exp %34 : vector<8x128xf32>
    %cst_19 = arith.constant 0.000000e+00 : f32
    %36 = vector.broadcast %cst_19 : f32 to vector<8x128xf32>
    %37 = arith.select %11, %35, %36 : vector<8x128xi1>, vector<8x128xf32>
    %cst_20 = arith.constant dense<0.000000e+00> : vector<8xf32>
    %38 = vector.multi_reduction <add>, %37, %cst_20 [1] : vector<8x128xf32> to vector<8xf32>
    %39 = vector.shape_cast %38 : vector<8xf32> to vector<8x1xf32>
    %40 = arith.addf %32, %39 : vector<8x1xf32>
    %c0_21 = arith.constant 0 : index
    %c0_22 = arith.constant 0 : index
    %41 = vector.load %arg11[%c0_21, %c0_22] : memref<8x1xf32, #tpu.memory_space<vmem>>, vector<8x1xf32>
    tpu.vector_store %arg11[%c0_21, %c0_22], %40 {strides = array<i32>} : memref<8x1xf32, #tpu.memory_space<vmem>>, vector<8x1xf32>,
    %c0_23 = arith.constant 0 : index
    %c0_24 = arith.constant 0 : index
    %42 = vector.load %arg10[%c0_23, %c0_24] : memref<8x1xf32, #tpu.memory_space<vmem>>, vector<8x1xf32>
    tpu.vector_store %arg10[%c0_23, %c0_24], %28 {strides = array<i32>} : memref<8x1xf32, #tpu.memory_space<vmem>>, vector<8x1xf32>,
    %43 = vector.broadcast %26 : vector<8x1xf32> to vector<8x128xf32>
    %44 = arith.cmpf oeq, %13, %43 : vector<8x128xf32>
    %c2147483647_i32 = arith.constant 2147483647 : i32
    %45 = vector.broadcast %c2147483647_i32 : i32 to vector<8x128xi32>
    %46 = arith.select %44, %9, %45 : vector<8x128xi1>, vector<8x128xi32>
    %cst_25 = arith.constant dense<2147483647> : vector<8xi32>
    %47 = vector.multi_reduction <minsi>, %46, %cst_25 [1] : vector<8x128xi32> to vector<8xi32>
    %48 = vector.shape_cast %47 : vector<8xi32> to vector<8x1xi32>
    %c0_26 = arith.constant 0 : index
    %c0_27 = arith.constant 0 : index
    %49 = vector.load %arg13[%c0_26, %c0_27] : memref<8x1xf32, #tpu.memory_space<vmem>>, vector<8x1xf32>
    %50 = arith.cmpf ogt, %26, %49 : vector<8x1xf32>
    %c0_28 = arith.constant 0 : index
    %c0_29 = arith.constant 0 : index
    %51 = vector.load %arg13[%c0_28, %c0_29] : memref<8x1xf32, #tpu.memory_space<vmem>>, vector<8x1xf32>
    %52 = arith.select %50, %26, %51 : vector<8x1xi1>, vector<8x1xf32>
    %c0_30 = arith.constant 0 : index
    %c0_31 = arith.constant 0 : index
    %53 = vector.load %arg13[%c0_30, %c0_31] : memref<8x1xf32, #tpu.memory_space<vmem>>, vector<8x1xf32>
    tpu.vector_store %arg13[%c0_30, %c0_31], %52 {strides = array<i32>} : memref<8x1xf32, #tpu.memory_space<vmem>>, vector<8x1xf32>,
    %c0_32 = arith.constant 0 : index
    %c0_33 = arith.constant 0 : index
    %54 = vector.load %arg14[%c0_32, %c0_33] : memref<8x1xi32, #tpu.memory_space<vmem>>, vector<8x1xi32>
    %55 = arith.select %50, %48, %54 : vector<8x1xi1>, vector<8x1xi32>
    %c0_34 = arith.constant 0 : index
    %c0_35 = arith.constant 0 : index
    %56 = vector.load %arg14[%c0_34, %c0_35] : memref<8x1xi32, #tpu.memory_space<vmem>>, vector<8x1xi32>
    tpu.vector_store %arg14[%c0_34, %c0_35], %55 {strides = array<i32>} : memref<8x1xi32, #tpu.memory_space<vmem>>, vector<8x1xi32>,
    %c0_i32_36 = arith.constant 0 : i32
    %57 = arith.cmpi eq, %arg1, %c0_i32_36 : i32
    %58 = arith.extui %57 : i1 to i32
    %c0_i32_37 = arith.constant 0 : i32
    %59 = arith.cmpi ne, %58, %c0_i32_37 : i32
    scf.if %59 {
      %c0_38 = arith.constant 0 : index
      %c0_39 = arith.constant 0 : index
      %60 = vector.load %arg10[%c0_38, %c0_39] : memref<8x1xf32, #tpu.memory_space<vmem>>, vector<8x1xf32>
      %c0_40 = arith.constant 0 : index
      %c0_41 = arith.constant 0 : index
      %61 = vector.load %arg11[%c0_40, %c0_41] : memref<8x1xf32, #tpu.memory_space<vmem>>, vector<8x1xf32>
      %62 = math.log %61 : vector<8x1xf32>
      %63 = arith.addf %60, %62 : vector<8x1xf32>
      %c0_42 = arith.constant 0 : index
      %c0_43 = arith.constant 0 : index
      %64 = vector.load %arg12[%c0_42, %c0_43] : memref<8x1xf32, #tpu.memory_space<vmem>>, vector<8x1xf32>
      %65 = arith.subf %63, %64 : vector<8x1xf32>
      %66 = vector.shape_cast %65 : vector<8x1xf32> to vector<1x1x8xf32>
      %c0_44 = arith.constant 0 : index
      %c0_45 = arith.constant 0 : index
      %c0_46 = arith.constant 0 : index
      %67 = vector.load %arg7[%c0_44, %c0_45, %c0_46] : memref<1x1x8xf32, #tpu.memory_space<vmem>>, vector<1x1x8xf32>
      tpu.vector_store %arg7[%c0_44, %c0_45, %c0_46], %66 {strides = array<i32>} : memref<1x1x8xf32, #tpu.memory_space<vmem>>, vector<1x1x8xf32>,
      %c0_47 = arith.constant 0 : index
      %c0_48 = arith.constant 0 : index
      %68 = vector.load %arg14[%c0_47, %c0_48] : memref<8x1xi32, #tpu.memory_space<vmem>>, vector<8x1xi32>
      %69 = vector.shape_cast %68 : vector<8x1xi32> to vector<1x1x8xi32>
      %c0_49 = arith.constant 0 : index
      %c0_50 = arith.constant 0 : index
      %c0_51 = arith.constant 0 : index
      %70 = vector.load %arg8[%c0_49, %c0_50, %c0_51] : memref<1x1x8xi32, #tpu.memory_space<vmem>>, vector<1x1x8xi32>
      tpu.vector_store %arg8[%c0_49, %c0_50, %c0_51], %69 {strides = array<i32>} : memref<1x1x8xi32, #tpu.memory_space<vmem>>, vector<1x1x8xi32>,
    } else {
    }
    return
  }
  func.func @transform_0(%arg0: i32, %arg1: i32) -> (i32, i32, i32) {
    %c0_i32 = arith.constant 0 : i32
    %c0_i32_0 = arith.constant 0 : i32
    %c0_i32_1 = arith.constant 0 : i32
    return %arg0, %c0_i32, %c0_i32_0 : i32, i32, i32
  }
  func.func @transform_1(%arg0: i32, %arg1: i32) -> (i32, i32) {
    %c0_i32 = arith.constant 0 : i32
    %c0_i32_0 = arith.constant 0 : i32
    %c0_i32_1 = arith.constant 0 : i32
    return %c0_i32, %c0_i32_0 : i32, i32
  }
  func.func @transform_2(%arg0: i32, %arg1: i32) -> (i32, i32) {
    %c0_i32 = arith.constant 0 : i32
    %c0_i32_0 = arith.constant 0 : i32
    %c0_i32_1 = arith.constant 0 : i32
    return %c0_i32, %c0_i32_0 : i32, i32
  }
  func.func @transform_3(%arg0: i32, %arg1: i32) -> (i32, i32) {
    %c0_i32 = arith.constant 0 : i32
    %c0_i32_0 = arith.constant 0 : i32
    return %c0_i32, %arg1 : i32, i32
  }
  func.func @transform_4(%arg0: i32, %arg1: i32) -> (i32, i32, i32) {
    %c0_i32 = arith.constant 0 : i32
    %c0_i32_0 = arith.constant 0 : i32
    %c0_i32_1 = arith.constant 0 : i32
    return %arg0, %c0_i32, %c0_i32_0 : i32, i32, i32
  }
  func.func @transform_5(%arg0: i32, %arg1: i32) -> (i32, i32, i32) {
    %c0_i32 = arith.constant 0 : i32
    %c0_i32_0 = arith.constant 0 : i32
    %c0_i32_1 = arith.constant 0 : i32
    return %arg0, %c0_i32, %c0_i32_0 : i32, i32, i32
  }
  func.func @transform_6(%arg0: i32, %arg1: i32) -> (i32, i32, i32) {
    %c0_i32 = arith.constant 0 : i32
    %c0_i32_0 = arith.constant 0 : i32
    %c0_i32_1 = arith.constant 0 : i32
    return %arg0, %c0_i32, %c0_i32_0 : i32, i32, i32
  }
}

module attributes {stable_mosaic.version = 11 : i64} {
  func.func @_block_kernel(%arg0: i32, %arg1: memref<1x8x32xbf16, #tpu.memory_space<vmem>>, %arg2: memref<1x32xf32, #tpu.memory_space<vmem>>, %arg3: memref<1x32xf32, #tpu.memory_space<vmem>>, %arg4: memref<32x96xbf16, #tpu.memory_space<vmem>>, %arg5: memref<1x96xf32, #tpu.memory_space<vmem>>, %arg6: memref<32x32xbf16, #tpu.memory_space<vmem>>, %arg7: memref<1x32xf32, #tpu.memory_space<vmem>>, %arg8: memref<1x32xf32, #tpu.memory_space<vmem>>, %arg9: memref<1x32xf32, #tpu.memory_space<vmem>>, %arg10: memref<32x128xbf16, #tpu.memory_space<vmem>>, %arg11: memref<1x128xf32, #tpu.memory_space<vmem>>, %arg12: memref<128x32xbf16, #tpu.memory_space<vmem>>, %arg13: memref<1x32xf32, #tpu.memory_space<vmem>>, %arg14: memref<1x8x32xbf16, #tpu.memory_space<vmem>>) attributes {dimension_semantics = [#tpu.dimension_semantics<parallel>], iteration_bounds = array<i64: 2>, scalar_prefetch = 0 : i64, scratch_operands = 0 : i64, tpu.core_type = #tpu.core_type<tc>, window_params = [{transform_indices = @transform_0, window_bounds = array<i64: 1, 8, 32>}, {pipeline_mode = #tpu.pipeline_mode<synchronous>, transform_indices = @transform_1, window_bounds = array<i64: 1, 32>}, {pipeline_mode = #tpu.pipeline_mode<synchronous>, transform_indices = @transform_2, window_bounds = array<i64: 1, 32>}, {pipeline_mode = #tpu.pipeline_mode<synchronous>, transform_indices = @transform_3, window_bounds = array<i64: 32, 96>}, {pipeline_mode = #tpu.pipeline_mode<synchronous>, transform_indices = @transform_4, window_bounds = array<i64: 1, 96>}, {pipeline_mode = #tpu.pipeline_mode<synchronous>, transform_indices = @transform_5, window_bounds = array<i64: 32, 32>}, {pipeline_mode = #tpu.pipeline_mode<synchronous>, transform_indices = @transform_6, window_bounds = array<i64: 1, 32>}, {pipeline_mode = #tpu.pipeline_mode<synchronous>, transform_indices = @transform_7, window_bounds = array<i64: 1, 32>}, {pipeline_mode = #tpu.pipeline_mode<synchronous>, transform_indices = @transform_8, window_bounds = array<i64: 1, 32>}, {pipeline_mode = #tpu.pipeline_mode<synchronous>, transform_indices = @transform_9, window_bounds = array<i64: 32, 128>}, {pipeline_mode = #tpu.pipeline_mode<synchronous>, transform_indices = @transform_10, window_bounds = array<i64: 1, 128>}, {pipeline_mode = #tpu.pipeline_mode<synchronous>, transform_indices = @transform_11, window_bounds = array<i64: 128, 32>}, {pipeline_mode = #tpu.pipeline_mode<synchronous>, transform_indices = @transform_12, window_bounds = array<i64: 1, 32>}, {transform_indices = @transform_13, window_bounds = array<i64: 1, 8, 32>}]} {
    %c0 = arith.constant 0 : index
    %c0_0 = arith.constant 0 : index
    %c0_1 = arith.constant 0 : index
    %0 = vector.load %arg1[%c0, %c0_0, %c0_1] : memref<1x8x32xbf16, #tpu.memory_space<vmem>>, vector<1x8x32xbf16>
    %1 = vector.shape_cast %0 : vector<1x8x32xbf16> to vector<8x32xbf16>
    %2 = arith.extf %1 : vector<8x32xbf16> to vector<8x32xf32>
    %c0_2 = arith.constant 0 : index
    %c0_3 = arith.constant 0 : index
    %3 = vector.load %arg2[%c0_2, %c0_3] : memref<1x32xf32, #tpu.memory_space<vmem>>, vector<1x32xf32>
    %c0_4 = arith.constant 0 : index
    %c0_5 = arith.constant 0 : index
    %4 = vector.load %arg3[%c0_4, %c0_5] : memref<1x32xf32, #tpu.memory_space<vmem>>, vector<1x32xf32>
    %cst = arith.constant dense<0.000000e+00> : vector<8xf32>
    %5 = vector.multi_reduction <add>, %2, %cst [1] : vector<8x32xf32> to vector<8xf32>
    %6 = vector.shape_cast %5 : vector<8xf32> to vector<8x1xf32>
    %cst_6 = arith.constant 3.200000e+01 : f32
    %7 = vector.broadcast %cst_6 : f32 to vector<8x1xf32>
    %8 = arith.divf %6, %7 : vector<8x1xf32>
    %9 = vector.broadcast %8 : vector<8x1xf32> to vector<8x32xf32>
    %10 = arith.subf %2, %9 : vector<8x32xf32>
    %11 = arith.mulf %10, %10 : vector<8x32xf32>
    %cst_7 = arith.constant dense<0.000000e+00> : vector<8xf32>
    %12 = vector.multi_reduction <add>, %11, %cst_7 [1] : vector<8x32xf32> to vector<8xf32>
    %13 = vector.shape_cast %12 : vector<8xf32> to vector<8x1xf32>
    %cst_8 = arith.constant 3.200000e+01 : f32
    %14 = vector.broadcast %cst_8 : f32 to vector<8x1xf32>
    %15 = arith.divf %13, %14 : vector<8x1xf32>
    %16 = vector.broadcast %8 : vector<8x1xf32> to vector<8x32xf32>
    %17 = arith.subf %2, %16 : vector<8x32xf32>
    %cst_9 = arith.constant 9.99999974E-6 : f32
    %18 = vector.broadcast %cst_9 : f32 to vector<8x1xf32>
    %19 = arith.addf %15, %18 : vector<8x1xf32>
    %20 = math.rsqrt %19 : vector<8x1xf32>
    %21 = vector.broadcast %20 : vector<8x1xf32> to vector<8x32xf32>
    %22 = arith.mulf %17, %21 : vector<8x32xf32>
    %23 = vector.broadcast %3 : vector<1x32xf32> to vector<8x32xf32>
    %24 = arith.mulf %22, %23 : vector<8x32xf32>
    %25 = vector.broadcast %4 : vector<1x32xf32> to vector<8x32xf32>
    %26 = arith.addf %24, %25 : vector<8x32xf32>
    %27 = arith.truncf %26 : vector<8x32xf32> to vector<8x32xbf16>
    %c0_10 = arith.constant 0 : index
    %c0_11 = arith.constant 0 : index
    %28 = vector.load %arg4[%c0_10, %c0_11] : memref<32x96xbf16, #tpu.memory_space<vmem>>, vector<32x96xbf16>
    %cst_12 = arith.constant dense<0.000000e+00> : vector<8x96xf32>
    %29 = tpu.matmul %27, %28, %cst_12 {dimension_numbers = #tpu.dot_dimension_numbers<[1], [0], [0], [1], [0, 0, 1, 1], [], []>} : vector<8x32xbf16>, vector<32x96xbf16>, vector<8x96xf32> -> vector<8x96xf32>
    %c0_13 = arith.constant 0 : index
    %c0_14 = arith.constant 0 : index
    %30 = vector.load %arg5[%c0_13, %c0_14] : memref<1x96xf32, #tpu.memory_space<vmem>>, vector<1x96xf32>
    %31 = vector.broadcast %30 : vector<1x96xf32> to vector<8x96xf32>
    %32 = arith.addf %29, %31 : vector<8x96xf32>
    %33 = vector.extract_strided_slice %32 {offsets = [0, 0], sizes = [8, 8], strides = [1, 1]} : vector<8x96xf32> to vector<8x8xf32>
    %34 = vector.shape_cast %33 : vector<8x8xf32> to vector<1x1x8x8xf32>
    %35 = vector.extract_strided_slice %32 {offsets = [0, 8], sizes = [8, 8], strides = [1, 1]} : vector<8x96xf32> to vector<8x8xf32>
    %36 = vector.shape_cast %35 : vector<8x8xf32> to vector<1x1x8x8xf32>
    %37 = vector.extract_strided_slice %32 {offsets = [0, 16], sizes = [8, 8], strides = [1, 1]} : vector<8x96xf32> to vector<8x8xf32>
    %38 = vector.shape_cast %37 : vector<8x8xf32> to vector<1x1x8x8xf32>
    %39 = vector.extract_strided_slice %32 {offsets = [0, 24], sizes = [8, 8], strides = [1, 1]} : vector<8x96xf32> to vector<8x8xf32>
    %40 = vector.shape_cast %39 : vector<8x8xf32> to vector<1x1x8x8xf32>
    %41 = tpu.concatenate %34, %36, %38, %40 in 1 : vector<1x1x8x8xf32>, vector<1x1x8x8xf32>, vector<1x1x8x8xf32>, vector<1x1x8x8xf32> -> vector<1x4x8x8xf32>
    %42 = vector.shape_cast %41 : vector<1x4x8x8xf32> to vector<4x8x8xf32>
    %43 = arith.truncf %42 : vector<4x8x8xf32> to vector<4x8x8xbf16>
    %44 = vector.extract_strided_slice %32 {offsets = [0, 32], sizes = [8, 8], strides = [1, 1]} : vector<8x96xf32> to vector<8x8xf32>
    %45 = vector.shape_cast %44 : vector<8x8xf32> to vector<1x1x8x8xf32>
    %46 = vector.extract_strided_slice %32 {offsets = [0, 40], sizes = [8, 8], strides = [1, 1]} : vector<8x96xf32> to vector<8x8xf32>
    %47 = vector.shape_cast %46 : vector<8x8xf32> to vector<1x1x8x8xf32>
    %48 = vector.extract_strided_slice %32 {offsets = [0, 48], sizes = [8, 8], strides = [1, 1]} : vector<8x96xf32> to vector<8x8xf32>
    %49 = vector.shape_cast %48 : vector<8x8xf32> to vector<1x1x8x8xf32>
    %50 = vector.extract_strided_slice %32 {offsets = [0, 56], sizes = [8, 8], strides = [1, 1]} : vector<8x96xf32> to vector<8x8xf32>
    %51 = vector.shape_cast %50 : vector<8x8xf32> to vector<1x1x8x8xf32>
    %52 = tpu.concatenate %45, %47, %49, %51 in 1 : vector<1x1x8x8xf32>, vector<1x1x8x8xf32>, vector<1x1x8x8xf32>, vector<1x1x8x8xf32> -> vector<1x4x8x8xf32>
    %53 = vector.shape_cast %52 : vector<1x4x8x8xf32> to vector<4x8x8xf32>
    %54 = arith.truncf %53 : vector<4x8x8xf32> to vector<4x8x8xbf16>
    %55 = vector.extract_strided_slice %32 {offsets = [0, 64], sizes = [8, 8], strides = [1, 1]} : vector<8x96xf32> to vector<8x8xf32>
    %56 = vector.shape_cast %55 : vector<8x8xf32> to vector<1x1x8x8xf32>
    %57 = vector.extract_strided_slice %32 {offsets = [0, 72], sizes = [8, 8], strides = [1, 1]} : vector<8x96xf32> to vector<8x8xf32>
    %58 = vector.shape_cast %57 : vector<8x8xf32> to vector<1x1x8x8xf32>
    %59 = vector.extract_strided_slice %32 {offsets = [0, 80], sizes = [8, 8], strides = [1, 1]} : vector<8x96xf32> to vector<8x8xf32>
    %60 = vector.shape_cast %59 : vector<8x8xf32> to vector<1x1x8x8xf32>
    %61 = vector.extract_strided_slice %32 {offsets = [0, 88], sizes = [8, 8], strides = [1, 1]} : vector<8x96xf32> to vector<8x8xf32>
    %62 = vector.shape_cast %61 : vector<8x8xf32> to vector<1x1x8x8xf32>
    %63 = tpu.concatenate %56, %58, %60, %62 in 1 : vector<1x1x8x8xf32>, vector<1x1x8x8xf32>, vector<1x1x8x8xf32>, vector<1x1x8x8xf32> -> vector<1x4x8x8xf32>
    %64 = vector.shape_cast %63 : vector<1x4x8x8xf32> to vector<4x8x8xf32>
    %65 = arith.truncf %64 : vector<4x8x8xf32> to vector<4x8x8xbf16>
    %66 = tpu.iota {dimensions = array<i32: 0>} : vector<8x8xi32>
    %67 = tpu.iota {dimensions = array<i32: 1>} : vector<8x8xi32>
    %cst_15 = arith.constant -1.000000e+30 : f32
    %68 = vector.broadcast %cst_15 : f32 to vector<4x8x1xf32>
    %cst_16 = arith.constant 0.000000e+00 : f32
    %69 = vector.broadcast %cst_16 : f32 to vector<4x8x1xf32>
    %cst_17 = arith.constant 0.000000e+00 : f32
    %70 = vector.broadcast %cst_17 : f32 to vector<4x8x8xf32>
    "tpu.trace_start"() <{level = 10 : i32, message = "gtd,gsd->gts"}> : () -> ()
    %cst_18 = arith.constant dense<0.000000e+00> : vector<4x8x8xf32>
    %71 = tpu.matmul %43, %54, %cst_18 {dimension_numbers = #tpu.dot_dimension_numbers<[2], [2], [1], [1], [0, 0, 0, 1, 1, 1], [0], [0]>} : vector<4x8x8xbf16>, vector<4x8x8xbf16>, vector<4x8x8xf32> -> vector<4x8x8xf32>
    "tpu.trace_stop"() : () -> ()
    %cst_19 = arith.constant 0.353553385 : f32
    %72 = vector.broadcast %cst_19 : f32 to vector<4x8x8xf32>
    %73 = arith.mulf %71, %72 : vector<4x8x8xf32>
    %c0_i32 = arith.constant 0 : i32
    %74 = vector.broadcast %c0_i32 : i32 to vector<8x8xi32>
    %75 = arith.addi %67, %74 : vector<8x8xi32>
    %76 = arith.cmpi sle, %75, %66 : vector<8x8xi32>
    %cst_20 = arith.constant -1.000000e+04 : f32
    %77 = vector.shape_cast %76 : vector<8x8xi1> to vector<1x8x8xi1>
    %78 = vector.broadcast %77 : vector<1x8x8xi1> to vector<4x8x8xi1>
    %79 = vector.broadcast %cst_20 : f32 to vector<4x8x8xf32>
    %80 = arith.select %78, %73, %79 : vector<4x8x8xi1>, vector<4x8x8xf32>
    %cst_21 = arith.constant dense<0xFF800000> : vector<4x8xf32>
    %81 = vector.multi_reduction <maximumf>, %80, %cst_21 [2] : vector<4x8x8xf32> to vector<4x8xf32>
    %82 = vector.shape_cast %81 : vector<4x8xf32> to vector<4x8x1xf32>
    %83 = arith.maximumf %68, %82 : vector<4x8x1xf32>
    %84 = arith.subf %68, %83 : vector<4x8x1xf32>
    %85 = math.exp %84 : vector<4x8x1xf32>
    %86 = vector.broadcast %83 : vector<4x8x1xf32> to vector<4x8x8xf32>
    %87 = arith.subf %80, %86 : vector<4x8x8xf32>
    %88 = math.exp %87 : vector<4x8x8xf32>
    %89 = arith.mulf %85, %69 : vector<4x8x1xf32>
    %cst_22 = arith.constant dense<0.000000e+00> : vector<4x8xf32>
    %90 = vector.multi_reduction <add>, %88, %cst_22 [2] : vector<4x8x8xf32> to vector<4x8xf32>
    %91 = vector.shape_cast %90 : vector<4x8xf32> to vector<4x8x1xf32>
    %92 = arith.addf %89, %91 : vector<4x8x1xf32>
    %93 = vector.broadcast %85 : vector<4x8x1xf32> to vector<4x8x8xf32>
    %94 = arith.mulf %93, %70 : vector<4x8x8xf32>
    %95 = arith.truncf %88 : vector<4x8x8xf32> to vector<4x8x8xbf16>
    "tpu.trace_start"() <{level = 10 : i32, message = "gts,gsd->gtd"}> : () -> ()
    %cst_23 = arith.constant dense<0.000000e+00> : vector<4x8x8xf32>
    %96 = tpu.matmul %95, %65, %cst_23 {dimension_numbers = #tpu.dot_dimension_numbers<[2], [1], [1], [2], [0, 0, 0, 1, 1, 2], [0], [0]>} : vector<4x8x8xbf16>, vector<4x8x8xbf16>, vector<4x8x8xf32> -> vector<4x8x8xf32>
    "tpu.trace_stop"() : () -> ()
    %97 = arith.addf %94, %96 : vector<4x8x8xf32>
    %98 = tpu.reciprocal %92 {approx = true} : vector<4x8x1xf32> -> vector<4x8x1xf32>
    %99 = vector.broadcast %98 : vector<4x8x1xf32> to vector<4x8x8xf32>
    %100 = arith.mulf %97, %99 : vector<4x8x8xf32>
    %101 = vector.shape_cast %100 : vector<4x8x8xf32> to vector<1x4x8x8xf32>
    %102 = vector.extract_strided_slice %101 {offsets = [0, 0, 0, 0], sizes = [1, 1, 8, 8], strides = [1, 1, 1, 1]} : vector<1x4x8x8xf32> to vector<1x1x8x8xf32>
    %103 = vector.shape_cast %102 : vector<1x1x8x8xf32> to vector<1x8x8xf32>
    %104 = vector.shape_cast %103 : vector<1x8x8xf32> to vector<8x8xf32>
    %105 = vector.extract_strided_slice %101 {offsets = [0, 1, 0, 0], sizes = [1, 1, 8, 8], strides = [1, 1, 1, 1]} : vector<1x4x8x8xf32> to vector<1x1x8x8xf32>
    %106 = vector.shape_cast %105 : vector<1x1x8x8xf32> to vector<1x8x8xf32>
    %107 = vector.shape_cast %106 : vector<1x8x8xf32> to vector<8x8xf32>
    %108 = vector.extract_strided_slice %101 {offsets = [0, 2, 0, 0], sizes = [1, 1, 8, 8], strides = [1, 1, 1, 1]} : vector<1x4x8x8xf32> to vector<1x1x8x8xf32>
    %109 = vector.shape_cast %108 : vector<1x1x8x8xf32> to vector<1x8x8xf32>
    %110 = vector.shape_cast %109 : vector<1x8x8xf32> to vector<8x8xf32>
    %111 = vector.extract_strided_slice %101 {offsets = [0, 3, 0, 0], sizes = [1, 1, 8, 8], strides = [1, 1, 1, 1]} : vector<1x4x8x8xf32> to vector<1x1x8x8xf32>
    %112 = vector.shape_cast %111 : vector<1x1x8x8xf32> to vector<1x8x8xf32>
    %113 = vector.shape_cast %112 : vector<1x8x8xf32> to vector<8x8xf32>
    %114 = tpu.concatenate %104, %107, %110, %113 in 1 : vector<8x8xf32>, vector<8x8xf32>, vector<8x8xf32>, vector<8x8xf32> -> vector<8x32xf32>
    %115 = arith.truncf %114 : vector<8x32xf32> to vector<8x32xbf16>
    %c0_24 = arith.constant 0 : index
    %c0_25 = arith.constant 0 : index
    %116 = vector.load %arg6[%c0_24, %c0_25] : memref<32x32xbf16, #tpu.memory_space<vmem>>, vector<32x32xbf16>
    %cst_26 = arith.constant dense<0.000000e+00> : vector<8x32xf32>
    %117 = tpu.matmul %115, %116, %cst_26 {dimension_numbers = #tpu.dot_dimension_numbers<[1], [0], [0], [1], [0, 0, 1, 1], [], []>} : vector<8x32xbf16>, vector<32x32xbf16>, vector<8x32xf32> -> vector<8x32xf32>
    %c0_27 = arith.constant 0 : index
    %c0_28 = arith.constant 0 : index
    %118 = vector.load %arg7[%c0_27, %c0_28] : memref<1x32xf32, #tpu.memory_space<vmem>>, vector<1x32xf32>
    %119 = vector.broadcast %118 : vector<1x32xf32> to vector<8x32xf32>
    %120 = arith.addf %117, %119 : vector<8x32xf32>
    %121 = arith.addf %2, %120 : vector<8x32xf32>
    %c0_29 = arith.constant 0 : index
    %c0_30 = arith.constant 0 : index
    %122 = vector.load %arg8[%c0_29, %c0_30] : memref<1x32xf32, #tpu.memory_space<vmem>>, vector<1x32xf32>
    %c0_31 = arith.constant 0 : index
    %c0_32 = arith.constant 0 : index
    %123 = vector.load %arg9[%c0_31, %c0_32] : memref<1x32xf32, #tpu.memory_space<vmem>>, vector<1x32xf32>
    %cst_33 = arith.constant dense<0.000000e+00> : vector<8xf32>
    %124 = vector.multi_reduction <add>, %121, %cst_33 [1] : vector<8x32xf32> to vector<8xf32>
    %125 = vector.shape_cast %124 : vector<8xf32> to vector<8x1xf32>
    %cst_34 = arith.constant 3.200000e+01 : f32
    %126 = vector.broadcast %cst_34 : f32 to vector<8x1xf32>
    %127 = arith.divf %125, %126 : vector<8x1xf32>
    %128 = vector.broadcast %127 : vector<8x1xf32> to vector<8x32xf32>
    %129 = arith.subf %121, %128 : vector<8x32xf32>
    %130 = arith.mulf %129, %129 : vector<8x32xf32>
    %cst_35 = arith.constant dense<0.000000e+00> : vector<8xf32>
    %131 = vector.multi_reduction <add>, %130, %cst_35 [1] : vector<8x32xf32> to vector<8xf32>
    %132 = vector.shape_cast %131 : vector<8xf32> to vector<8x1xf32>
    %cst_36 = arith.constant 3.200000e+01 : f32
    %133 = vector.broadcast %cst_36 : f32 to vector<8x1xf32>
    %134 = arith.divf %132, %133 : vector<8x1xf32>
    %135 = vector.broadcast %127 : vector<8x1xf32> to vector<8x32xf32>
    %136 = arith.subf %121, %135 : vector<8x32xf32>
    %cst_37 = arith.constant 9.99999974E-6 : f32
    %137 = vector.broadcast %cst_37 : f32 to vector<8x1xf32>
    %138 = arith.addf %134, %137 : vector<8x1xf32>
    %139 = math.rsqrt %138 : vector<8x1xf32>
    %140 = vector.broadcast %139 : vector<8x1xf32> to vector<8x32xf32>
    %141 = arith.mulf %136, %140 : vector<8x32xf32>
    %142 = vector.broadcast %122 : vector<1x32xf32> to vector<8x32xf32>
    %143 = arith.mulf %141, %142 : vector<8x32xf32>
    %144 = vector.broadcast %123 : vector<1x32xf32> to vector<8x32xf32>
    %145 = arith.addf %143, %144 : vector<8x32xf32>
    %146 = arith.truncf %145 : vector<8x32xf32> to vector<8x32xbf16>
    %c0_38 = arith.constant 0 : index
    %c0_39 = arith.constant 0 : index
    %147 = vector.load %arg10[%c0_38, %c0_39] : memref<32x128xbf16, #tpu.memory_space<vmem>>, vector<32x128xbf16>
    %cst_40 = arith.constant dense<0.000000e+00> : vector<8x128xf32>
    %148 = tpu.matmul %146, %147, %cst_40 {dimension_numbers = #tpu.dot_dimension_numbers<[1], [0], [0], [1], [0, 0, 1, 1], [], []>} : vector<8x32xbf16>, vector<32x128xbf16>, vector<8x128xf32> -> vector<8x128xf32>
    %c0_41 = arith.constant 0 : index
    %c0_42 = arith.constant 0 : index
    %149 = vector.load %arg11[%c0_41, %c0_42] : memref<1x128xf32, #tpu.memory_space<vmem>>, vector<1x128xf32>
    %150 = vector.broadcast %149 : vector<1x128xf32> to vector<8x128xf32>
    %151 = arith.addf %148, %150 : vector<8x128xf32>
    %cst_43 = arith.constant 5.000000e-01 : f32
    %152 = vector.broadcast %cst_43 : f32 to vector<8x128xf32>
    %153 = arith.mulf %152, %151 : vector<8x128xf32>
    %cst_44 = arith.constant 4.471500e-02 : f32
    %154 = vector.broadcast %cst_44 : f32 to vector<8x128xf32>
    %155 = arith.mulf %154, %151 : vector<8x128xf32>
    %156 = arith.mulf %155, %151 : vector<8x128xf32>
    %157 = arith.mulf %156, %151 : vector<8x128xf32>
    %158 = arith.addf %151, %157 : vector<8x128xf32>
    %cst_45 = arith.constant 0.797884583 : f32
    %159 = vector.broadcast %cst_45 : f32 to vector<8x128xf32>
    %160 = arith.mulf %159, %158 : vector<8x128xf32>
    %161 = math.tanh %160 : vector<8x128xf32>
    %cst_46 = arith.constant 1.000000e+00 : f32
    %162 = vector.broadcast %cst_46 : f32 to vector<8x128xf32>
    %163 = arith.addf %162, %161 : vector<8x128xf32>
    %164 = arith.mulf %153, %163 : vector<8x128xf32>
    %165 = arith.truncf %164 : vector<8x128xf32> to vector<8x128xbf16>
    %c0_47 = arith.constant 0 : index
    %c0_48 = arith.constant 0 : index
    %166 = vector.load %arg12[%c0_47, %c0_48] : memref<128x32xbf16, #tpu.memory_space<vmem>>, vector<128x32xbf16>
    %cst_49 = arith.constant dense<0.000000e+00> : vector<8x32xf32>
    %167 = tpu.matmul %165, %166, %cst_49 {dimension_numbers = #tpu.dot_dimension_numbers<[1], [0], [0], [1], [0, 0, 1, 1], [], []>} : vector<8x128xbf16>, vector<128x32xbf16>, vector<8x32xf32> -> vector<8x32xf32>
    %c0_50 = arith.constant 0 : index
    %c0_51 = arith.constant 0 : index
    %168 = vector.load %arg13[%c0_50, %c0_51] : memref<1x32xf32, #tpu.memory_space<vmem>>, vector<1x32xf32>
    %169 = vector.broadcast %168 : vector<1x32xf32> to vector<8x32xf32>
    %170 = arith.addf %167, %169 : vector<8x32xf32>
    %171 = arith.addf %121, %170 : vector<8x32xf32>
    %172 = vector.shape_cast %171 : vector<8x32xf32> to vector<1x8x32xf32>
    %173 = arith.truncf %172 : vector<1x8x32xf32> to vector<1x8x32xbf16>
    %c0_52 = arith.constant 0 : index
    %c0_53 = arith.constant 0 : index
    %c0_54 = arith.constant 0 : index
    %174 = vector.load %arg14[%c0_52, %c0_53, %c0_54] : memref<1x8x32xbf16, #tpu.memory_space<vmem>>, vector<1x8x32xbf16>
    tpu.vector_store %arg14[%c0_52, %c0_53, %c0_54], %173 {strides = array<i32>} : memref<1x8x32xbf16, #tpu.memory_space<vmem>>, vector<1x8x32xbf16>,
    return
  }
  func.func @transform_0(%arg0: i32) -> (i32, i32, i32) {
    %c0_i32 = arith.constant 0 : i32
    %c0_i32_0 = arith.constant 0 : i32
    %c0_i32_1 = arith.constant 0 : i32
    return %arg0, %c0_i32, %c0_i32_0 : i32, i32, i32
  }
  func.func @transform_1(%arg0: i32) -> (i32, i32) {
    %c0_i32 = arith.constant 0 : i32
    %c0_i32_0 = arith.constant 0 : i32
    %c0_i32_1 = arith.constant 0 : i32
    return %c0_i32, %c0_i32_0 : i32, i32
  }
  func.func @transform_2(%arg0: i32) -> (i32, i32) {
    %c0_i32 = arith.constant 0 : i32
    %c0_i32_0 = arith.constant 0 : i32
    %c0_i32_1 = arith.constant 0 : i32
    return %c0_i32, %c0_i32_0 : i32, i32
  }
  func.func @transform_3(%arg0: i32) -> (i32, i32) {
    %c0_i32 = arith.constant 0 : i32
    %c0_i32_0 = arith.constant 0 : i32
    %c0_i32_1 = arith.constant 0 : i32
    return %c0_i32, %c0_i32_0 : i32, i32
  }
  func.func @transform_4(%arg0: i32) -> (i32, i32) {
    %c0_i32 = arith.constant 0 : i32
    %c0_i32_0 = arith.constant 0 : i32
    %c0_i32_1 = arith.constant 0 : i32
    return %c0_i32, %c0_i32_0 : i32, i32
  }
  func.func @transform_5(%arg0: i32) -> (i32, i32) {
    %c0_i32 = arith.constant 0 : i32
    %c0_i32_0 = arith.constant 0 : i32
    %c0_i32_1 = arith.constant 0 : i32
    return %c0_i32, %c0_i32_0 : i32, i32
  }
  func.func @transform_6(%arg0: i32) -> (i32, i32) {
    %c0_i32 = arith.constant 0 : i32
    %c0_i32_0 = arith.constant 0 : i32
    %c0_i32_1 = arith.constant 0 : i32
    return %c0_i32, %c0_i32_0 : i32, i32
  }
  func.func @transform_7(%arg0: i32) -> (i32, i32) {
    %c0_i32 = arith.constant 0 : i32
    %c0_i32_0 = arith.constant 0 : i32
    %c0_i32_1 = arith.constant 0 : i32
    return %c0_i32, %c0_i32_0 : i32, i32
  }
  func.func @transform_8(%arg0: i32) -> (i32, i32) {
    %c0_i32 = arith.constant 0 : i32
    %c0_i32_0 = arith.constant 0 : i32
    %c0_i32_1 = arith.constant 0 : i32
    return %c0_i32, %c0_i32_0 : i32, i32
  }
  func.func @transform_9(%arg0: i32) -> (i32, i32) {
    %c0_i32 = arith.constant 0 : i32
    %c0_i32_0 = arith.constant 0 : i32
    %c0_i32_1 = arith.constant 0 : i32
    return %c0_i32, %c0_i32_0 : i32, i32
  }
  func.func @transform_10(%arg0: i32) -> (i32, i32) {
    %c0_i32 = arith.constant 0 : i32
    %c0_i32_0 = arith.constant 0 : i32
    %c0_i32_1 = arith.constant 0 : i32
    return %c0_i32, %c0_i32_0 : i32, i32
  }
  func.func @transform_11(%arg0: i32) -> (i32, i32) {
    %c0_i32 = arith.constant 0 : i32
    %c0_i32_0 = arith.constant 0 : i32
    %c0_i32_1 = arith.constant 0 : i32
    return %c0_i32, %c0_i32_0 : i32, i32
  }
  func.func @transform_12(%arg0: i32) -> (i32, i32) {
    %c0_i32 = arith.constant 0 : i32
    %c0_i32_0 = arith.constant 0 : i32
    %c0_i32_1 = arith.constant 0 : i32
    return %c0_i32, %c0_i32_0 : i32, i32
  }
  func.func @transform_13(%arg0: i32) -> (i32, i32, i32) {
    %c0_i32 = arith.constant 0 : i32
    %c0_i32_0 = arith.constant 0 : i32
    %c0_i32_1 = arith.constant 0 : i32
    return %arg0, %c0_i32, %c0_i32_0 : i32, i32, i32
  }
}

module attributes {stable_mosaic.version = 11 : i64} {
  func.func @_lnf_head_ce_kernel(%arg0: i32, %arg1: i32, %arg2: memref<1x8x32xbf16, #tpu.memory_space<vmem>>, %arg3: memref<1x32xf32, #tpu.memory_space<vmem>>, %arg4: memref<1x32xf32, #tpu.memory_space<vmem>>, %arg5: memref<32x128xbf16, #tpu.memory_space<vmem>>, %arg6: memref<1x1x8xi32, #tpu.memory_space<vmem>>, %arg7: memref<1x8x128xbf16, #tpu.memory_space<vmem>>, %arg8: memref<1x1x8xf32, #tpu.memory_space<vmem>>, %arg9: memref<1x1x8xi32, #tpu.memory_space<vmem>>, %arg10: memref<8x32xbf16, #tpu.memory_space<vmem>>, %arg11: memref<8x1xf32, #tpu.memory_space<vmem>>, %arg12: memref<8x1xf32, #tpu.memory_space<vmem>>, %arg13: memref<8x1xf32, #tpu.memory_space<vmem>>, %arg14: memref<8x1xf32, #tpu.memory_space<vmem>>, %arg15: memref<8x1xi32, #tpu.memory_space<vmem>>) attributes {dimension_semantics = [#tpu.dimension_semantics<parallel>, #tpu.dimension_semantics<arbitrary>], iteration_bounds = array<i64: 2, 1>, scalar_prefetch = 0 : i64, scratch_operands = 6 : i64, tpu.core_type = #tpu.core_type<tc>, window_params = [{transform_indices = @transform_0, window_bounds = array<i64: 1, 8, 32>}, {pipeline_mode = #tpu.pipeline_mode<synchronous>, transform_indices = @transform_1, window_bounds = array<i64: 1, 32>}, {pipeline_mode = #tpu.pipeline_mode<synchronous>, transform_indices = @transform_2, window_bounds = array<i64: 1, 32>}, {transform_indices = @transform_3, window_bounds = array<i64: 32, 128>}, {transform_indices = @transform_4, window_bounds = array<i64: 1, 1, 8>}, {transform_indices = @transform_5, window_bounds = array<i64: 1, 8, 128>}, {transform_indices = @transform_6, window_bounds = array<i64: 1, 1, 8>}, {transform_indices = @transform_7, window_bounds = array<i64: 1, 1, 8>}]} {
    %c0_i32 = arith.constant 0 : i32
    %0 = arith.cmpi eq, %arg1, %c0_i32 : i32
    %1 = arith.extui %0 : i1 to i32
    %c0_i32_0 = arith.constant 0 : i32
    %2 = arith.cmpi ne, %1, %c0_i32_0 : i32
    scf.if %2 {
      %c0_41 = arith.constant 0 : index
      %c0_42 = arith.constant 0 : index
      %c0_43 = arith.constant 0 : index
      %63 = vector.load %arg2[%c0_41, %c0_42, %c0_43] : memref<1x8x32xbf16, #tpu.memory_space<vmem>>, vector<1x8x32xbf16>
      %64 = vector.shape_cast %63 : vector<1x8x32xbf16> to vector<8x32xbf16>
      %65 = arith.extf %64 : vector<8x32xbf16> to vector<8x32xf32>
      %c0_44 = arith.constant 0 : index
      %c0_45 = arith.constant 0 : index
      %66 = vector.load %arg3[%c0_44, %c0_45] : memref<1x32xf32, #tpu.memory_space<vmem>>, vector<1x32xf32>
      %c0_46 = arith.constant 0 : index
      %c0_47 = arith.constant 0 : index
      %67 = vector.load %arg4[%c0_46, %c0_47] : memref<1x32xf32, #tpu.memory_space<vmem>>, vector<1x32xf32>
      %cst_48 = arith.constant dense<0.000000e+00> : vector<8xf32>
      %68 = vector.multi_reduction <add>, %65, %cst_48 [1] : vector<8x32xf32> to vector<8xf32>
      %69 = vector.shape_cast %68 : vector<8xf32> to vector<8x1xf32>
      %cst_49 = arith.constant 3.200000e+01 : f32
      %70 = vector.broadcast %cst_49 : f32 to vector<8x1xf32>
      %71 = arith.divf %69, %70 : vector<8x1xf32>
      %72 = vector.broadcast %71 : vector<8x1xf32> to vector<8x32xf32>
      %73 = arith.subf %65, %72 : vector<8x32xf32>
      %74 = arith.mulf %73, %73 : vector<8x32xf32>
      %cst_50 = arith.constant dense<0.000000e+00> : vector<8xf32>
      %75 = vector.multi_reduction <add>, %74, %cst_50 [1] : vector<8x32xf32> to vector<8xf32>
      %76 = vector.shape_cast %75 : vector<8xf32> to vector<8x1xf32>
      %cst_51 = arith.constant 3.200000e+01 : f32
      %77 = vector.broadcast %cst_51 : f32 to vector<8x1xf32>
      %78 = arith.divf %76, %77 : vector<8x1xf32>
      %79 = vector.broadcast %71 : vector<8x1xf32> to vector<8x32xf32>
      %80 = arith.subf %65, %79 : vector<8x32xf32>
      %cst_52 = arith.constant 9.99999974E-6 : f32
      %81 = vector.broadcast %cst_52 : f32 to vector<8x1xf32>
      %82 = arith.addf %78, %81 : vector<8x1xf32>
      %83 = math.rsqrt %82 : vector<8x1xf32>
      %84 = vector.broadcast %83 : vector<8x1xf32> to vector<8x32xf32>
      %85 = arith.mulf %80, %84 : vector<8x32xf32>
      %86 = vector.broadcast %66 : vector<1x32xf32> to vector<8x32xf32>
      %87 = arith.mulf %85, %86 : vector<8x32xf32>
      %88 = vector.broadcast %67 : vector<1x32xf32> to vector<8x32xf32>
      %89 = arith.addf %87, %88 : vector<8x32xf32>
      %90 = arith.truncf %89 : vector<8x32xf32> to vector<8x32xbf16>
      %c0_53 = arith.constant 0 : index
      %c0_54 = arith.constant 0 : index
      %91 = vector.load %arg10[%c0_53, %c0_54] : memref<8x32xbf16, #tpu.memory_space<vmem>>, vector<8x32xbf16>
      tpu.vector_store %arg10[%c0_53, %c0_54], %90 {strides = array<i32>} : memref<8x32xbf16, #tpu.memory_space<vmem>>, vector<8x32xbf16>,
      %cst_55 = arith.constant -1.000000e+30 : f32
      %92 = vector.broadcast %cst_55 : f32 to vector<8x1xf32>
      %c0_56 = arith.constant 0 : index
      %c0_57 = arith.constant 0 : index
      %93 = vector.load %arg11[%c0_56, %c0_57] : memref<8x1xf32, #tpu.memory_space<vmem>>, vector<8x1xf32>
      tpu.vector_store %arg11[%c0_56, %c0_57], %92 {strides = array<i32>} : memref<8x1xf32, #tpu.memory_space<vmem>>, vector<8x1xf32>,
      %cst_58 = arith.constant 0.000000e+00 : f32
      %94 = vector.broadcast %cst_58 : f32 to vector<8x1xf32>
      %c0_59 = arith.constant 0 : index
      %c0_60 = arith.constant 0 : index
      %95 = vector.load %arg12[%c0_59, %c0_60] : memref<8x1xf32, #tpu.memory_space<vmem>>, vector<8x1xf32>
      tpu.vector_store %arg12[%c0_59, %c0_60], %94 {strides = array<i32>} : memref<8x1xf32, #tpu.memory_space<vmem>>, vector<8x1xf32>,
      %cst_61 = arith.constant 0.000000e+00 : f32
      %96 = vector.broadcast %cst_61 : f32 to vector<8x1xf32>
      %c0_62 = arith.constant 0 : index
      %c0_63 = arith.constant 0 : index
      %97 = vector.load %arg13[%c0_62, %c0_63] : memref<8x1xf32, #tpu.memory_space<vmem>>, vector<8x1xf32>
      tpu.vector_store %arg13[%c0_62, %c0_63], %96 {strides = array<i32>} : memref<8x1xf32, #tpu.memory_space<vmem>>, vector<8x1xf32>,
      %cst_64 = arith.constant -1.000000e+30 : f32
      %98 = vector.broadcast %cst_64 : f32 to vector<8x1xf32>
      %c0_65 = arith.constant 0 : index
      %c0_66 = arith.constant 0 : index
      %99 = vector.load %arg14[%c0_65, %c0_66] : memref<8x1xf32, #tpu.memory_space<vmem>>, vector<8x1xf32>
      tpu.vector_store %arg14[%c0_65, %c0_66], %98 {strides = array<i32>} : memref<8x1xf32, #tpu.memory_space<vmem>>, vector<8x1xf32>,
      %c0_i32_67 = arith.constant 0 : i32
      %100 = vector.broadcast %c0_i32_67 : i32 to vector<8x1xi32>
      %c0_68 = arith.constant 0 : index
      %c0_69 = arith.constant 0 : index
      %101 = vector.load %arg15[%c0_68, %c0_69] : memref<8x1xi32, #tpu.memory_space<vmem>>, vector<8x1xi32>
      tpu.vector_store %arg15[%c0_68, %c0_69], %100 {strides = array<i32>} : memref<8x1xi32, #tpu.memory_space<vmem>>, vector<8x1xi32>,
    } else {
    }
    %c0 = arith.constant 0 : index
    %c0_1 = arith.constant 0 : index
    %3 = vector.load %arg10[%c0, %c0_1] : memref<8x32xbf16, #tpu.memory_space<vmem>>, vector<8x32xbf16>
    %c0_2 = arith.constant 0 : index
    %c0_3 = arith.constant 0 : index
    %4 = vector.load %arg5[%c0_2, %c0_3] : memref<32x128xbf16, #tpu.memory_space<vmem>>, vector<32x128xbf16>
    %cst = arith.constant dense<0.000000e+00> : vector<8x128xf32>
    %5 = tpu.matmul %3, %4, %cst {dimension_numbers = #tpu.dot_dimension_numbers<[1], [0], [0], [1], [0, 0, 1, 1], [], []>} : vector<8x32xbf16>, vector<32x128xbf16>, vector<8x128xf32> -> vector<8x128xf32>
    %6 = tpu.iota {dimensions = array<i32: 1>} : vector<8x128xi32>
    %c128_i32 = arith.constant 128 : i32
    %7 = arith.muli %arg1, %c128_i32 : i32
    %8 = vector.broadcast %7 : i32 to vector<8x128xi32>
    %9 = arith.addi %6, %8 : vector<8x128xi32>
    %c64_i32 = arith.constant 64 : i32
    %10 = vector.broadcast %c64_i32 : i32 to vector<8x128xi32>
    %11 = arith.cmpi slt, %9, %10 : vector<8x128xi32>
    %cst_4 = arith.constant -1.000000e+30 : f32
    %12 = vector.broadcast %cst_4 : f32 to vector<8x128xf32>
    %13 = arith.select %11, %5, %12 : vector<8x128xi1>, vector<8x128xf32>
    %14 = vector.shape_cast %5 : vector<8x128xf32> to vector<1x8x128xf32>
    %15 = arith.truncf %14 : vector<1x8x128xf32> to vector<1x8x128xbf16>
    %c0_5 = arith.constant 0 : index
    %c0_6 = arith.constant 0 : index
    %c0_7 = arith.constant 0 : index
    %16 = vector.load %arg7[%c0_5, %c0_6, %c0_7] : memref<1x8x128xbf16, #tpu.memory_space<vmem>>, vector<1x8x128xbf16>
    tpu.vector_store %arg7[%c0_5, %c0_6, %c0_7], %15 {strides = array<i32>} : memref<1x8x128xbf16, #tpu.memory_space<vmem>>, vector<1x8x128xbf16>,
    %c0_8 = arith.constant 0 : index
    %c0_9 = arith.constant 0 : index
    %c0_10 = arith.constant 0 : index
    %17 = vector.load %arg6[%c0_8, %c0_9, %c0_10] : memref<1x1x8xi32, #tpu.memory_space<vmem>>, vector<1x1x8xi32>
    %18 = vector.shape_cast %17 : vector<1x1x8xi32> to vector<8x1xi32>
    %c0_11 = arith.constant 0 : index
    %c0_12 = arith.constant 0 : index
    %19 = vector.load %arg13[%c0_11, %c0_12] : memref<8x1xf32, #tpu.memory_space<vmem>>, vector<8x1xf32>
    %20 = vector.broadcast %18 : vector<8x1xi32> to vector<8x128xi32>
    %21 = arith.cmpi eq, %9, %20 : vector<8x128xi32>
    %cst_13 = arith.constant 0.000000e+00 : f32
    %22 = vector.broadcast %cst_13 : f32 to vector<8x128xf32>
    %23 = arith.select %21, %5, %22 : vector<8x128xi1>, vector<8x128xf32>
    %cst_14 = arith.constant dense<0.000000e+00> : vector<8xf32>
    %24 = vector.multi_reduction <add>, %23, %cst_14 [1] : vector<8x128xf32> to vector<8xf32>
    %25 = vector.shape_cast %24 : vector<8xf32> to vector<8x1xf32>
    %26 = arith.addf %19, %25 : vector<8x1xf32>
    %c0_15 = arith.constant 0 : index
    %c0_16 = arith.constant 0 : index
    %27 = vector.load %arg13[%c0_15, %c0_16] : memref<8x1xf32, #tpu.memory_space<vmem>>, vector<8x1xf32>
    tpu.vector_store %arg13[%c0_15, %c0_16], %26 {strides = array<i32>} : memref<8x1xf32, #tpu.memory_space<vmem>>, vector<8x1xf32>,
    %cst_17 = arith.constant dense<0xFF800000> : vector<8xf32>
    %28 = vector.multi_reduction <maximumf>, %13, %cst_17 [1] : vector<8x128xf32> to vector<8xf32>
    %29 = vector.shape_cast %28 : vector<8xf32> to vector<8x1xf32>
    %c0_18 = arith.constant 0 : index
    %c0_19 = arith.constant 0 : index
    %30 = vector.load %arg11[%c0_18, %c0_19] : memref<8x1xf32, #tpu.memory_space<vmem>>, vector<8x1xf32>
    %31 = arith.maximumf %30, %29 : vector<8x1xf32>
    %c0_20 = arith.constant 0 : index
    %c0_21 = arith.constant 0 : index
    %32 = vector.load %arg12[%c0_20, %c0_21] : memref<8x1xf32, #tpu.memory_space<vmem>>, vector<8x1xf32>
    %33 = arith.subf %30, %31 : vector<8x1xf32>
    %34 = math.exp %33 : vector<8x1xf32>
    %35 = arith.mulf %32, %34 : vector<8x1xf32>
    %36 = vector.broadcast %31 : vector<8x1xf32> to vector<8x128xf32>
    %37 = arith.subf %13, %36 : vector<8x128xf32>
    %38 = math.exp %37 : vector<8x128xf32>
    %cst_22 = arith.constant 0.000000e+00 : f32
    %39 = vector.broadcast %cst_22 : f32 to vector<8x128xf32>
    %40 = arith.select %11, %38, %39 : vector<8x128xi1>, vector<8x128xf32>
    %cst_23 = arith.constant dense<0.000000e+00> : vector<8xf32>
    %41 = vector.multi_reduction <add>, %40, %cst_23 [1] : vector<8x128xf32> to vector<8xf32>
    %42 = vector.shape_cast %41 : vector<8xf32> to vector<8x1xf32>
    %43 = arith.addf %35, %42 : vector<8x1xf32>
    %c0_24 = arith.constant 0 : index
    %c0_25 = arith.constant 0 : index
    %44 = vector.load %arg12[%c0_24, %c0_25] : memref<8x1xf32, #tpu.memory_space<vmem>>, vector<8x1xf32>
    tpu.vector_store %arg12[%c0_24, %c0_25], %43 {strides = array<i32>} : memref<8x1xf32, #tpu.memory_space<vmem>>, vector<8x1xf32>,
    %c0_26 = arith.constant 0 : index
    %c0_27 = arith.constant 0 : index
    %45 = vector.load %arg11[%c0_26, %c0_27] : memref<8x1xf32, #tpu.memory_space<vmem>>, vector<8x1xf32>
    tpu.vector_store %arg11[%c0_26, %c0_27], %31 {strides = array<i32>} : memref<8x1xf32, #tpu.memory_space<vmem>>, vector<8x1xf32>,
    %46 = vector.broadcast %29 : vector<8x1xf32> to vector<8x128xf32>
    %47 = arith.cmpf oeq, %13, %46 : vector<8x128xf32>
    %c2147483647_i32 = arith.constant 2147483647 : i32
    %48 = vector.broadcast %c2147483647_i32 : i32 to vector<8x128xi32>
    %49 = arith.select %47, %9, %48 : vector<8x128xi1>, vector<8x128xi32>
    %cst_28 = arith.constant dense<2147483647> : vector<8xi32>
    %50 = vector.multi_reduction <minsi>, %49, %cst_28 [1] : vector<8x128xi32> to vector<8xi32>
    %51 = vector.shape_cast %50 : vector<8xi32> to vector<8x1xi32>
    %c0_29 = arith.constant 0 : index
    %c0_30 = arith.constant 0 : index
    %52 = vector.load %arg14[%c0_29, %c0_30] : memref<8x1xf32, #tpu.memory_space<vmem>>, vector<8x1xf32>
    %53 = arith.cmpf ogt, %29, %52 : vector<8x1xf32>
    %c0_31 = arith.constant 0 : index
    %c0_32 = arith.constant 0 : index
    %54 = vector.load %arg14[%c0_31, %c0_32] : memref<8x1xf32, #tpu.memory_space<vmem>>, vector<8x1xf32>
    %55 = arith.select %53, %29, %54 : vector<8x1xi1>, vector<8x1xf32>
    %c0_33 = arith.constant 0 : index
    %c0_34 = arith.constant 0 : index
    %56 = vector.load %arg14[%c0_33, %c0_34] : memref<8x1xf32, #tpu.memory_space<vmem>>, vector<8x1xf32>
    tpu.vector_store %arg14[%c0_33, %c0_34], %55 {strides = array<i32>} : memref<8x1xf32, #tpu.memory_space<vmem>>, vector<8x1xf32>,
    %c0_35 = arith.constant 0 : index
    %c0_36 = arith.constant 0 : index
    %57 = vector.load %arg15[%c0_35, %c0_36] : memref<8x1xi32, #tpu.memory_space<vmem>>, vector<8x1xi32>
    %58 = arith.select %53, %51, %57 : vector<8x1xi1>, vector<8x1xi32>
    %c0_37 = arith.constant 0 : index
    %c0_38 = arith.constant 0 : index
    %59 = vector.load %arg15[%c0_37, %c0_38] : memref<8x1xi32, #tpu.memory_space<vmem>>, vector<8x1xi32>
    tpu.vector_store %arg15[%c0_37, %c0_38], %58 {strides = array<i32>} : memref<8x1xi32, #tpu.memory_space<vmem>>, vector<8x1xi32>,
    %c0_i32_39 = arith.constant 0 : i32
    %60 = arith.cmpi eq, %arg1, %c0_i32_39 : i32
    %61 = arith.extui %60 : i1 to i32
    %c0_i32_40 = arith.constant 0 : i32
    %62 = arith.cmpi ne, %61, %c0_i32_40 : i32
    scf.if %62 {
      %c0_41 = arith.constant 0 : index
      %c0_42 = arith.constant 0 : index
      %63 = vector.load %arg11[%c0_41, %c0_42] : memref<8x1xf32, #tpu.memory_space<vmem>>, vector<8x1xf32>
      %c0_43 = arith.constant 0 : index
      %c0_44 = arith.constant 0 : index
      %64 = vector.load %arg12[%c0_43, %c0_44] : memref<8x1xf32, #tpu.memory_space<vmem>>, vector<8x1xf32>
      %65 = math.log %64 : vector<8x1xf32>
      %66 = arith.addf %63, %65 : vector<8x1xf32>
      %c0_45 = arith.constant 0 : index
      %c0_46 = arith.constant 0 : index
      %67 = vector.load %arg13[%c0_45, %c0_46] : memref<8x1xf32, #tpu.memory_space<vmem>>, vector<8x1xf32>
      %68 = arith.subf %66, %67 : vector<8x1xf32>
      %69 = vector.shape_cast %68 : vector<8x1xf32> to vector<1x1x8xf32>
      %c0_47 = arith.constant 0 : index
      %c0_48 = arith.constant 0 : index
      %c0_49 = arith.constant 0 : index
      %70 = vector.load %arg8[%c0_47, %c0_48, %c0_49] : memref<1x1x8xf32, #tpu.memory_space<vmem>>, vector<1x1x8xf32>
      tpu.vector_store %arg8[%c0_47, %c0_48, %c0_49], %69 {strides = array<i32>} : memref<1x1x8xf32, #tpu.memory_space<vmem>>, vector<1x1x8xf32>,
      %c0_50 = arith.constant 0 : index
      %c0_51 = arith.constant 0 : index
      %71 = vector.load %arg15[%c0_50, %c0_51] : memref<8x1xi32, #tpu.memory_space<vmem>>, vector<8x1xi32>
      %72 = vector.shape_cast %71 : vector<8x1xi32> to vector<1x1x8xi32>
      %c0_52 = arith.constant 0 : index
      %c0_53 = arith.constant 0 : index
      %c0_54 = arith.constant 0 : index
      %73 = vector.load %arg9[%c0_52, %c0_53, %c0_54] : memref<1x1x8xi32, #tpu.memory_space<vmem>>, vector<1x1x8xi32>
      tpu.vector_store %arg9[%c0_52, %c0_53, %c0_54], %72 {strides = array<i32>} : memref<1x1x8xi32, #tpu.memory_space<vmem>>, vector<1x1x8xi32>,
    } else {
    }
    return
  }
  func.func @transform_0(%arg0: i32, %arg1: i32) -> (i32, i32, i32) {
    %c0_i32 = arith.constant 0 : i32
    %c0_i32_0 = arith.constant 0 : i32
    %c0_i32_1 = arith.constant 0 : i32
    return %arg0, %c0_i32, %c0_i32_0 : i32, i32, i32
  }
  func.func @transform_1(%arg0: i32, %arg1: i32) -> (i32, i32) {
    %c0_i32 = arith.constant 0 : i32
    %c0_i32_0 = arith.constant 0 : i32
    %c0_i32_1 = arith.constant 0 : i32
    return %c0_i32, %c0_i32_0 : i32, i32
  }
  func.func @transform_2(%arg0: i32, %arg1: i32) -> (i32, i32) {
    %c0_i32 = arith.constant 0 : i32
    %c0_i32_0 = arith.constant 0 : i32
    %c0_i32_1 = arith.constant 0 : i32
    return %c0_i32, %c0_i32_0 : i32, i32
  }
  func.func @transform_3(%arg0: i32, %arg1: i32) -> (i32, i32) {
    %c0_i32 = arith.constant 0 : i32
    %c0_i32_0 = arith.constant 0 : i32
    return %c0_i32, %arg1 : i32, i32
  }
  func.func @transform_4(%arg0: i32, %arg1: i32) -> (i32, i32, i32) {
    %c0_i32 = arith.constant 0 : i32
    %c0_i32_0 = arith.constant 0 : i32
    %c0_i32_1 = arith.constant 0 : i32
    return %arg0, %c0_i32, %c0_i32_0 : i32, i32, i32
  }
  func.func @transform_5(%arg0: i32, %arg1: i32) -> (i32, i32, i32) {
    %c0_i32 = arith.constant 0 : i32
    %c0_i32_0 = arith.constant 0 : i32
    return %arg0, %c0_i32, %arg1 : i32, i32, i32
  }
  func.func @transform_6(%arg0: i32, %arg1: i32) -> (i32, i32, i32) {
    %c0_i32 = arith.constant 0 : i32
    %c0_i32_0 = arith.constant 0 : i32
    %c0_i32_1 = arith.constant 0 : i32
    return %arg0, %c0_i32, %c0_i32_0 : i32, i32, i32
  }
  func.func @transform_7(%arg0: i32, %arg1: i32) -> (i32, i32, i32) {
    %c0_i32 = arith.constant 0 : i32
    %c0_i32_0 = arith.constant 0 : i32
    %c0_i32_1 = arith.constant 0 : i32
    return %arg0, %c0_i32, %c0_i32_0 : i32, i32, i32
  }
}

</mosaic_0001>

<bundles_post_ra>
// kernel: _lambda_.8
= control target key start
LH: loop header
LB: loop body
LE: loop exit
PB: predicated region body
PF: predicated region fallthrough
CT: control target
= control target key end

     0   :  { %s738_s21 = smov 0   ;;  %s740_s22 = smov 0   ;;  %s822_s0 = inlined_call_operand.vmem [shape: bf16[2,8,32], index: 0, kind: input, shape index: {}]   ;;  %s823_s1 = inlined_call_operand.vmem [shape: f32[1,32], index: 1, kind: input, shape index: {}]   ;;  %s824_s2 = inlined_call_operand.vmem [shape: f32[1,32], index: 2, kind: input, shape index: {}]   ;;  %s825_s3 = inlined_call_operand.vmem [shape: bf16[32,128], index: 3, kind: input, shape index: {}]   ;;  %s826_s4 = inlined_call_operand.vmem [shape: s32[2,1,8], index: 4, kind: input, shape index: {}]   ;;  %s827_s5 = inlined_call_operand.vmem [shape: f32[2,1,8], index: 5, kind: output, shape index: {0}]   ;;  %s828_s6 = inlined_call_operand.vmem [shape: s32[2,1,8], index: 6, kind: output, shape index: {1}]  }
   0x1   :  { %s742_s23 = smov 0  }
   0x2 LB: > { %s29_s24 = sadd.s32 1, %s693_s22  ;;  %p614_p0 = scmp.ge.s32.totalorder %s697_s23, 1  ;;  %s697_s23 = sphi %s742_s23, %s17_s23   ;;  %s693_s22 = sphi %s740_s22, %s830_s22   ;;  %s689_s21 = sphi %s738_s21, %s829_s21  }
   0x3   : > { %p31_p1 = scmp.ge.s32.totalorder %s29_s24, 2  ;;  %p243_p2 = scmp.lt.s32.totalorder %s697_s23, 3 }
   0x5   : > { %s832_s24 = smov (%p31_p1, %s29_s24), 0  ;;  %p244_p3 = pnand %p614_p0, %p243_p2 }
   0x6   : > { %p280_p4 = scmp.lt.s32.totalorder (!%p244_p3), %s689_s21, 1 }
   0x7   : > { %247 = sbr.rel (%p244_p3) target bundleno = 1108 (0x454), region = 40 }
   0xc   : > { %s834_s21 = smov (!%p280_p4, %s689_s21), 1  ;;  %vm306_vm0 = vcmask 261120   ;;  %v665_v8 = vld [vmem:[%s825_s3 + $0x8] sm:$0xff]   ;;  %v699_v9 = vmov 0.0   ;;  %v666_v10 = vld [vmem:[%s825_s3] sm:$0xff]   ;;  %vm700_vm1 = vmmov 0   ;;  %v405_v23 = vlaneseq }
   0xd   : > { %s615_s25 = sshll.u32 %s834_s21, 2  ;;  %627 = vmatprep.subr.bf16.mxu0 %v699_v9  ;;  %631 = vmatprep.mubr.msk.bf16.mxu0 %vm700_vm1, %v699_v9  ;;  %v616_v15 = vld [vmem:[%s823_s1] ss:$0 sm:$0xff]  ;;  %vm336_vm2 = vcmask 257024   ;;  %vm338_vm3 = vcmask 7168   ;;  %v702_v30 = vmov 0   ;;  %s290_s15 = scalar_lea.vmem %s826_s4, %s834_s21 }
   0xe   : > { %s283_s28 = scalar_lea.vmem %s822_s0, %s615_s25  ;;  %628 = vmatpush3.bf16.msra.mxu0 %v665_v8  ;;  %v617_v17 = vld [vmem:[%s824_s2] ss:$0 sm:$0xff]  ;;  %v701_v22 = vmov -1e+30   ;;  %340 = vst.msk [vmem:[#allocation4] sm:$0xff] %vm338_vm3, %v699_v9  ;;  %341 = vst.msk [vmem:[#allocation5] sm:$0xff] %vm338_vm3, %v699_v9  ;;  %663 = vset.pattern.permute.xlu1 %v702_v30  ;;  %s296_s18 = scalar_lea.vmem %s828_s6, %s834_s21 }
   0xf   : > { %v302_v0 = vld [vmem:[%s283_s28] sm:$0xf]  ;;  %629 = vmatprep.subr.bf16.mxu0 %v699_v9  ;;  %342 = vst.msk [vmem:[#allocation6] sm:$0xff] %vm338_vm3, %v701_v22  ;;  %339 = vst.msk [vmem:[#allocation3] sm:$0xff] %vm338_vm3, %v701_v22  ;;  %v782_v24 = vand.u32 127, %v405_v23  ;;  %664 = vset.pattern.permute.xlu0 %v702_v30  ;;  %vm493_vm9 = vcmask 57344   ;;  %s293_s25 = scalar_lea.vmem %s827_s5, %s834_s21 }
  0x10   : > { %v303_v1 = vunpack.c.l.bf16 %v302_v0  ;;  %343 = vst.msk [vmem:[#allocation7] sm:$0xff] %vm338_vm3, %v702_v30  ;;  %v621_v40 = vld [vmem:[%s290_s15] ss:$0 sm:$0xff] }
  0x11   : > { %vm410_vm4 = vcmp.lt.s32.totalorder %v782_v24, 64 }
  0x12   : > { %v307_v2 = vsel %vm306_vm0, %v303_v1, 0.0  ;;  %630 = vmatpush3.bf16.msra.mxu0 %v666_v10 }
  0x13   : > { %308 = vadd.xlane.f32.xlu0 %v307_v2 }
  0x15   : > { %v432_v54 = vld [vmem:[#allocation4] sm:$0xff]  ;;  %v420_v63 = vld [vmem:[#allocation5] sm:$0xff] }
  0x16   : > { %v467_v31 = vld [vmem:[#allocation6] sm:$0xff]  ;;  %v430_v32 = vld [vmem:[#allocation3] sm:$0xff] }
  0x17   : > { %v471_v62 = vld [vmem:[#allocation7] sm:$0xff] }
  0x9c   : > { %v309_v3 = vpop.xlane.xlu0 %308 }
  0x9d   : > { %v311_v4 = vmul.f32 0.03125, %v309_v3 }
  0x9f   : > { %v312_v5 = vsub.f32 %v303_v1, %v311_v4 }
  0xa1   : > { %v313_v6 = vmul.f32 %v312_v5, %v312_v5 }
  0xa3   : > { %v314_v7 = vsel %vm306_vm0, %v313_v6, 0.0 }
  0xa4   : > { %315 = vadd.xlane.f32.xlu0 %v314_v7 }
 0x12d   : > { %v316_v11 = vpop.xlane.xlu0 %315 }
 0x12e   : > { %v317_v12 = vmul.f32 0.03125, %v316_v11 }
 0x130   : > { %v318_v13 = vadd.f32 1e-05, %v317_v12  ;;  %v489_v12 = vshrl.u32 %v405_v23, 7 }
 0x132   : > { %667 = vrsqrt.f32 %v318_v13  ;;  %v490_v13 = vsub.s32 %v782_v24, %v489_v12 }
 0x13f   : > { %v668_v14 = vpop.eup %667 }
 0x140   : > { %v320_v16 = vmul.f32 %v668_v14, %v312_v5 }
 0x142   : > { %v327_v18 = vmul.f32 %v616_v15, %v320_v16 }
 0x144   : > { %v334_v19 = vadd.f32 %v617_v17, %v327_v18 }
 0x146   : > { %v335_v20 = vpack.c.bf16 %v334_v19, %v334_v19 }
 0x148   : > { %337 = vst.msk [vmem:[#allocation2] sm:$0xf] %vm336_vm2, %v335_v20 }
 0x14f   : > { %v344_v21 = vld [vmem:[#allocation2] sm:$0xf] }
 0x150   : > { %632 = vmatmul.mubr.msk.bf16.vlgmr.msra.gmra.mxu0 %vm306_vm0, %v344_v21 }
 0x210   : > { %v399_v25 = vpop.f32.mrf.mxu0 }
 0x211   : > { %v411_v26 = vsel %vm410_vm4, %v399_v25, -1e+30 }
 0x212   : > { %428 = vmax.xlane.f32.xlu1 %v411_v26  ;;  %v633_v27 = vpop.f32.mrf.mxu0 }
 0x214   : > { %v402_v28 = vpop.f32.mrf.mxu0 }
 0x216   : > { %v634_v29 = vpop.f32.mrf.mxu0 }
 0x29b   : > { %v429_v33 = vpop.xlane.xlu1 %428 }
 0x29c   : > { %vm468_vm5 = vcmp.gt.f32.partialorder %v429_v33, %v467_v31  ;;  %v431_v34 = vmax.f32 %v430_v32, %v429_v33  ;;  %vm451_vm6 = vcmp.eq.f32.partialorder %v411_v26, %v429_v33 }
 0x29d   : > { %v469_v35 = vsel %vm468_vm5, %v429_v33, %v467_v31  ;;  %v452_v36 = vsel %vm451_vm6, %v782_v24, 2147483647 }
 0x29e   : > { %470 = vst.msk [vmem:[#allocation6] sm:$0xff] %vm338_vm3, %v469_v35  ;;  %439 = vperm.xlu1 %663, %v431_v34   ;;  %v433_v37 = vsub.f32 %v430_v32, %v431_v34  ;;  %450 = vst.msk [vmem:[#allocation3] sm:$0xff] %vm338_vm3, %v431_v34  ;;  %v454_v38 = vshra.s32 %v452_v36, 16  ;;  %v453_v44 = vand.u32 65535, %v452_v36 }
 0x2a0   : > { %v456_v39 = vcvt.s32.f32 %v454_v38  ;;  %v455_v47 = vcvt.s32.f32 %v453_v44  ;;  %v434_v52 = vmul.f32 1.442695, %v433_v37 }
 0x2a2   : > { %457 = vmin.xlane.f32.xlu0 %v456_v39 }
 0x2a5   : > { %v477_v8 = vld [vmem:[#allocation3] sm:$0xff] }
 0x2b8   : > { %418 = vbcast.lane.b32.xlu0 %v621_v40, 256 }
 0x319   : > { %v440_v41 = vpop.permute.xlu1 %439 }
 0x31a   : > { %v442_v42 = vsub.f32 %v411_v26, %v440_v41 }
 0x31c   : > { %v443_v43 = vmul.f32 1.442695, %v442_v42 }
 0x31e   : > { %669 = vpow2.f32 %v443_v43 }
 0x31f   : > { %671 = vpow2.f32 %v434_v52 }
 0x32b   : > { %v670_v45 = vpop.eup %669  ;;  %v458_v46 = vpop.xlane.xlu0 %457 }
 0x32c   : > { %v445_v48 = vsel %vm410_vm4, %v670_v45, 0.0  ;;  %vm459_vm7 = vcmp.eq.f32.partialorder %v456_v39, %v458_v46  ;;  %v672_v53 = vpop.eup %671  ;;  %v464_v55 = vcvt.f32.s32 %v458_v46 }
 0x32d   : > { %446 = vadd.xlane.f32.xlu1 %v445_v48  ;;  %v460_v49 = vsel %vm459_vm7, %v455_v47, inf  ;;  %v436_v56 = vmul.f32 %v672_v53, %v432_v54 }
 0x32e   : > { %461 = vmin.xlane.f32.xlu0 %v460_v49  ;;  %v465_v60 = vshll.u32 %v464_v55, 16 }
 0x32f   : > { %v419_v50 = vpop.permute.xlu0 %418 }
 0x330   : > { %vm421_vm8 = vcmp.eq.s32.totalorder %v782_v24, %v419_v50 }
 0x331   : > { %v422_v51 = vsel %vm421_vm8, %v399_v25, 0.0 }
 0x332   : > { %423 = vadd.xlane.f32.xlu1 %v422_v51 }
 0x3b6   : > { %v447_v57 = vpop.xlane.xlu1 %446 }
 0x3b7   : > { %v448_v58 = vadd.f32 %v447_v57, %v436_v56  ;;  %v462_v59 = vpop.xlane.xlu0 %461 }
 0x3b8   : > { %v463_v61 = vcvt.f32.s32 %v462_v59 }
 0x3b9   : > { %449 = vst.msk [vmem:[#allocation4] sm:$0xff] %vm338_vm3, %v448_v58 }
 0x3ba   : > { %v466_v0 = vadd.s32 %v465_v60, %v463_v61 }
 0x3bb   : > { %v424_v1 = vpop.xlane.xlu1 %423 }
 0x3bc   : > { %v472_v2 = vsel %vm468_vm5, %v466_v0, %v471_v62  ;;  %v425_v3 = vadd.f32 %v424_v1, %v420_v63 }
 0x3bd   : > { %473 = vst.msk [vmem:[#allocation7] sm:$0xff] %vm338_vm3, %v472_v2 }
 0x3be   : > { %427 = vst.msk [vmem:[#allocation5] sm:$0xff] %vm338_vm3, %v425_v3 }
 0x3c0   : > { %v478_v4 = vld [vmem:[#allocation4] sm:$0xff] }
 0x3c1   : > { %673 = vlog2.f32 %v478_v4 }
 0x3c4   : > { %v495_v5 = vld [vmem:[#allocation7] sm:$0xff] }
 0x3c5   : > { %497 = vperm.xlu0 %664, %v495_v5   ;;  %v482_v10 = vld [vmem:[#allocation5] sm:$0xff] }
 0x3ce   : > { %v674_v6 = vpop.eup %673 }
 0x3cf   : > { %v480_v7 = vmul.f32 0.6931472, %v674_v6 }
 0x3d1   : > { %v481_v9 = vadd.f32 %v480_v7, %v477_v8 }
 0x3d3   : > { %v483_v11 = vsub.f32 %v481_v9, %v482_v10 }
 0x3d5   : > { %486 = vperm.xlu1 %663, %v483_v11  }
 0x440   : > { %v498_v14 = vpop.permute.xlu0 %497 }
 0x441   : > { %v502_v15 = vrot.slane %v498_v14, %v490_v13 }
 0x443   : > { %503 = vst.msk [vmem:[%s296_s18] sm:$0x1] %vm493_vm9, %v502_v15 }
 0x450   : > { %v487_v16 = vpop.permute.xlu1 %486 }
 0x451   : > { %v491_v17 = vrot.slane %v487_v16, %v490_v13 }
 0x453   : > { %494 = vst.msk [vmem:[%s293_s25] sm:$0x1] %vm493_vm9, %v491_v17 }
 0x454 PF: > { %s17_s23 = sadd.s32 1, %s697_s23   ;;  %s829_s21 = smov %s693_s22 }
 0x455   : > { %p14_p5 = scmp.ge.s32.totalorder %s17_s23, 4   ;;  %s830_s22 = smov %s832_s24 }
 0x457   :  { %16 = sbr.rel (!%p14_p5) target bundleno = 2 (0x2), region = 96 }

// kernel: _lambda_.11
= control target key start
LH: loop header
LB: loop body
LE: loop exit
PB: predicated region body
PF: predicated region fallthrough
CT: control target
= control target key end

     0   :  { %s1160_s0 = inlined_call_operand.vmem [shape: bf16[2,8,32], index: 0, kind: input, shape index: {}]   ;;  %s1161_s1 = inlined_call_operand.vmem [shape: f32[1,32], index: 1, kind: input, shape index: {}]   ;;  %s1162_s2 = inlined_call_operand.vmem [shape: f32[1,32], index: 2, kind: input, shape index: {}]   ;;  %s1163_s3 = inlined_call_operand.vmem [shape: bf16[32,128], index: 3, kind: input, shape index: {}]   ;;  %s1164_s4 = inlined_call_operand.vmem [shape: s32[2,1,8], index: 4, kind: input, shape index: {}]   ;;  %s1165_s5 = inlined_call_operand.hbm [shape: bf16[2,8,128], index: 5, kind: output, shape index: {0}]   ;;  %s1166_s6 = inlined_call_operand.vmem [shape: f32[2,1,8], index: 6, kind: output, shape index: {1}]   ;;  %s1167_s7 = inlined_call_operand.hbm [shape: s32[2,1,8], index: 7, kind: output, shape index: {2}]  }
   0x1   :  { %1168 = sst [smem:[#allocation14_spill]] %s1160_s0 }
   0x2   :  { %1169 = sst [smem:[#allocation15_spill]] %s1161_s1 }
   0x3   :  { %13 = vsyncpa [#allocation9], 0 }
   0x4   :  { %15 = vsyncpa [#allocation9 + $0x1], 0 }
   0x5   :  { %16 = vsyncpa [#allocation11], 0 }
   0x6   :  { %18 = vsyncpa [#allocation11 + $0x1], 0  ;;  %s983_s24 = smov 0   ;;  %s985_s25 = smov 0  }
   0x7   :  { %s987_s26 = smov 0   ;;  %s989_s27 = smov 0  }
   0x8   :  { %s991_s28 = smov 0   ;;  %s993_s29 = smov 0  }
   0x9 LB: > { %s723_s30 = sadd.s32 4294967295, %s935_s29   ;;  %s724_s8 = sadd.s32 4294967294, %s935_s29   ;;  %s935_s29 = sphi %s993_s29, %s24_s29   ;;  %s931_s28 = sphi %s991_s28, %s1178_s28   ;;  %s927_s27 = sphi %s989_s27, %s1177_s27   ;;  %s923_s26 = sphi %s987_s26, %s1176_s26   ;;  %s919_s25 = sphi %s985_s25, %s1175_s25   ;;  %s915_s24 = sphi %s983_s24, %s1174_s24  }
   0xa   : > { %s36_s9 = sadd.s32 1, %s931_s28  ;;  %s165_s10 = sadd.s32 1, %s923_s26 }
   0xb   : > { %p38_p0 = scmp.ge.s32.totalorder %s36_s9, 2  ;;  %p175_p1 = scmp.ne.s32.totalorder %s923_s26, %s919_s25 }
   0xc   : > { %p176_p2 = scmp.eq.s32.totalorder %s723_s30, 1  ;;  %p181_p3 = scmp.ne.s32.totalorder %s919_s25, %s915_s24 }
   0xd   : > { %s1180_s9 = smov (%p38_p0, %s36_s9), 0  ;;  %p182_p5 = scmp.eq.s32.totalorder %s724_s8, 1 }
   0xe   : > { %p1023_p4 = por %p176_p2, %p175_p1  ;;  %s160_s12 = ssub.s32 %s931_s28, %s1180_s9 }
   0xf   : > { %p728_p6 = scmp.ge.s32.totalorder %s935_s29, 1  ;;  %p163_p7 = scmp.eq.s32.totalorder %s160_s12, 0 }
  0x10   : > { %p1030_p8 = por %p182_p5, %p181_p3  ;;  %p278_p9 = scmp.lt.s32.totalorder %s935_s29, 3 }
  0x11   : > { %s1036_s14 = scalar_select %p163_p7, %s923_s26, %s165_s10  }
  0x12   : > { %p279_p10 = pnand %p728_p6, %p278_p9 }
  0x13   : > { %p323_p11 = scmp.lt.s32.totalorder (!%p279_p10), %s927_s27, 1  ;;  %s1172_s0 = sld [smem:[#allocation14_spill]] (!%p279_p10) }
  0x14   : > { %282 = sbr.rel (%p279_p10) target bundleno = 1132 (0x46c), region = 40  ;;  %s1173_s1 = sld [smem:[#allocation15_spill]] (!%p279_p10) }
  0x15   : > { %s738_s22 = sshll.u32 (!%p279_p10), %s927_s27, 6 }
  0x16   : > { %s566_s10 = scalar_lea.hbm (!%p279_p10), %s1165_s5, %s738_s22 }
  0x19   : > { %s1040_s15 = scalar_select %p323_p11, %s927_s27, 1  ;;  %vm346_vm0 = vcmask 261120   ;;  %v819_v8 = vld [vmem:[%s1163_s3 + $0x8] sm:$0xff]   ;;  %v937_v9 = vmov 0.0   ;;  %v820_v10 = vld [vmem:[%s1163_s3] sm:$0xff]   ;;  %vm938_vm1 = vmmov 0   ;;  %v445_v23 = vlaneseq }
  0x1a   : > { %745 = vmatprep.subr.bf16.mxu0 %v937_v9  ;;  %749 = vmatprep.mubr.msk.bf16.mxu0 %vm938_vm1, %v937_v9  ;;  %v731_v15 = vld [vmem:[%s1173_s1] ss:$0 sm:$0xff]  ;;  %vm376_vm2 = vcmask 257024   ;;  %vm378_vm3 = vcmask 7168   ;;  %v939_v22 = vmov -1e+30  }
  0x1b   : > { %s730_s16 = sshll.u32 %s1040_s15, 2  ;;  %746 = vmatpush3.bf16.msra.mxu0 %v819_v8  ;;  %v732_v17 = vld [vmem:[%s1162_s2] ss:$0 sm:$0xff]  ;;  %382 = vst.msk [vmem:[#allocation6] sm:$0xff] %vm378_vm3, %v939_v22  ;;  %379 = vst.msk [vmem:[#allocation3] sm:$0xff] %vm378_vm3, %v939_v22  ;;  %v1066_v24 = vand.u32 127, %v445_v23  ;;  %s333_s21 = scalar_lea.vmem %s1164_s4, %s1040_s15 }
  0x1c   : > { %s326_s19 = scalar_lea.vmem %s1172_s0, %s730_s16  ;;  %747 = vmatprep.subr.bf16.mxu0 %v937_v9  ;;  %380 = vst.msk [vmem:[#allocation4] sm:$0xff] %vm378_vm3, %v937_v9  ;;  %381 = vst.msk [vmem:[#allocation5] sm:$0xff] %vm378_vm3, %v937_v9  ;;  %s1069_s16 = sand.u32 1, %s919_s25   ;;  %v940_v31 = vmov 0   ;;  %v736_v41 = vld [vmem:[%s333_s21] ss:$0 sm:$0xff] }
  0x1d   : > { %v342_v0 = vld [vmem:[%s326_s19] sm:$0xf]  ;;  %s729_s17 = sshll.u32 %s1069_s16, 2  ;;  %vm450_vm4 = vcmp.lt.s32.totalorder %v1066_v24, 64  ;;  %817 = vset.pattern.permute.xlu1 %v940_v31  ;;  %383 = vst.msk [vmem:[#allocation7] sm:$0xff] %vm378_vm3, %v940_v31  ;;  %818 = vset.pattern.permute.xlu0 %v940_v31  ;;  %s547_s12 = scalar_lea.sflag [#allocation9], %s1069_s16 }
  0x1e   : > { %v343_v1 = vunpack.c.l.bf16 %v342_v0  ;;  %s1075_s18 = scalar_lea.vmem [#allocation8], %s729_s17  ;;  %s941_s19 = smov [#allocation8]  }
  0x1f   : > { %748 = vmatpush3.bf16.msra.mxu0 %v820_v10  ;;  %s568_s23 = sshll.u32 %s1075_s18, 4  ;;  %s833_s20 = sshll.u32 %s941_s19, 4  ;;  %s569_s23 = int_to_ptr.vmem [resolvable:$true] %s568_s23  ;;  %s834_s20 = int_to_ptr.vmem [resolvable:$false] %s833_s20 }
  0x20   : > { %v347_v2 = vsel %vm346_vm0, %v343_v1, 0.0  ;;  %s829_s17 = scalar_lea.vmem %s569_s23, 64  ;;  %s835_s21 = scalar_lea.vmem %s834_s20, 128 }
  0x21   : > { %348 = vadd.xlane.f32.xlu0 %v347_v2  ;;  %p830_p12 = scmp.ne.s32.totalorder %s569_s23, %s829_s17  ;;  %p836_p1 = scmp.lt.s32.totalorder %s569_s23, %s834_s20 }
  0x22   : > { %v509_v32 = vld [vmem:[#allocation6] sm:$0xff]  ;;  %v472_v33 = vld [vmem:[#allocation3] sm:$0xff]  ;;  %p837_p2 = scmp.lt.s32.totalorder %s835_s21, %s829_s17 }
  0x23   : > { %v474_v55 = vld [vmem:[#allocation4] sm:$0xff]  ;;  %v462_v0 = vld [vmem:[#allocation5] sm:$0xff]  ;;  %p831_p13 = pnand %p830_p12, %p1023_p4 }
  0x24   : > { %v513_v63 = vld [vmem:[#allocation7] sm:$0xff]  ;;  %p838_p3 = por %p837_p2, %p836_p1 }
  0x25   : > { %p832_p0 = pneg %p831_p13 }
  0x27   : > { %p839_p5 = pnand %p838_p3, %p832_p0 }
  0xaa   : > { %v349_v3 = vpop.xlane.xlu0 %348 }
  0xab   : > { %v351_v4 = vmul.f32 0.03125, %v349_v3 }
  0xad   : > { %v352_v5 = vsub.f32 %v343_v1, %v351_v4 }
  0xaf   : > { %v353_v6 = vmul.f32 %v352_v5, %v352_v5 }
  0xb1   : > { %v354_v7 = vsel %vm346_vm0, %v353_v6, 0.0 }
  0xb2   : > { %355 = vadd.xlane.f32.xlu0 %v354_v7 }
 0x13b   : > { %v356_v11 = vpop.xlane.xlu0 %355 }
 0x13c   : > { %v357_v12 = vmul.f32 0.03125, %v356_v11 }
 0x13e   : > { %v358_v13 = vadd.f32 1e-05, %v357_v12 }
 0x140   : > { %821 = vrsqrt.f32 %v358_v13 }
 0x14d   : > { %v822_v14 = vpop.eup %821 }
 0x14e   : > { %v360_v16 = vmul.f32 %v822_v14, %v352_v5 }
 0x150   : > { %v367_v18 = vmul.f32 %v731_v15, %v360_v16 }
 0x152   : > { %v374_v19 = vadd.f32 %v732_v17, %v367_v18 }
 0x154   : > { %v375_v20 = vpack.c.bf16 %v374_v19, %v374_v19 }
 0x156   : > { %377 = vst.msk [vmem:[#allocation2] sm:$0xf] %vm376_vm2, %v375_v20 }
 0x15d   : > { %v384_v21 = vld [vmem:[#allocation2] sm:$0xf] }
 0x15e   : > { %750 = vmatmul.mubr.msk.bf16.vlgmr.msra.gmra.mxu0 %vm346_vm0, %v384_v21 }
 0x21e   : > { %v439_v25 = vpop.f32.mrf.mxu0 }
 0x21f   : > { %v452_v26 = vpack.c.bf16 %v439_v25, %v439_v25  ;;  %v451_v27 = vsel %vm450_vm4, %v439_v25, -1e+30 }
 0x220   : > { %470 = vmax.xlane.f32.xlu1 %v451_v27  ;;  %v751_v28 = vpop.f32.mrf.mxu0 }
 0x221   : > { %453 = vst [vmem:[%s1075_s18] sm:$0xf] %v452_v26 }
 0x222   : > { %v442_v29 = vpop.f32.mrf.mxu0 }
 0x224   : > { %v752_v30 = vpop.f32.mrf.mxu0 }
 0x2a9   : > { %v471_v34 = vpop.xlane.xlu1 %470 }
 0x2aa   : > { %vm510_vm5 = vcmp.gt.f32.partialorder %v471_v34, %v509_v32  ;;  %v473_v35 = vmax.f32 %v472_v33, %v471_v34  ;;  %vm493_vm6 = vcmp.eq.f32.partialorder %v451_v27, %v471_v34 }
 0x2ab   : > { %v511_v36 = vsel %vm510_vm5, %v471_v34, %v509_v32  ;;  %v494_v37 = vsel %vm493_vm6, %v1066_v24, 2147483647 }
 0x2ac   : > { %512 = vst.msk [vmem:[#allocation6] sm:$0xff] %vm378_vm3, %v511_v36  ;;  %481 = vperm.xlu1 %817, %v473_v35   ;;  %v475_v38 = vsub.f32 %v472_v33, %v473_v35  ;;  %492 = vst.msk [vmem:[#allocation3] sm:$0xff] %vm378_vm3, %v473_v35  ;;  %v496_v39 = vshra.s32 %v494_v37, 16  ;;  %v495_v45 = vand.u32 65535, %v494_v37 }
 0x2ae   : > { %v498_v40 = vcvt.s32.f32 %v496_v39  ;;  %v497_v48 = vcvt.s32.f32 %v495_v45  ;;  %v476_v53 = vmul.f32 1.442695, %v475_v38 }
 0x2b0   : > { %499 = vmin.xlane.f32.xlu0 %v498_v40 }
 0x2b3   : > { %v519_v9 = vld [vmem:[#allocation3] sm:$0xff] }
 0x2c6   : > { %460 = vbcast.lane.b32.xlu0 %v736_v41, 256 }
 0x327   : > { %v482_v42 = vpop.permute.xlu1 %481 }
 0x328   : > { %v484_v43 = vsub.f32 %v451_v27, %v482_v42 }
 0x32a   : > { %v485_v44 = vmul.f32 1.442695, %v484_v43 }
 0x32c   : > { %823 = vpow2.f32 %v485_v44 }
 0x32d   : > { %825 = vpow2.f32 %v476_v53 }
 0x339   : > { %v824_v46 = vpop.eup %823  ;;  %v500_v47 = vpop.xlane.xlu0 %499 }
 0x33a   : > { %v487_v49 = vsel %vm450_vm4, %v824_v46, 0.0  ;;  %vm501_vm7 = vcmp.eq.f32.partialorder %v498_v40, %v500_v47  ;;  %v826_v54 = vpop.eup %825  ;;  %v506_v56 = vcvt.f32.s32 %v500_v47 }
 0x33b   : > { %488 = vadd.xlane.f32.xlu1 %v487_v49  ;;  %v502_v50 = vsel %vm501_vm7, %v497_v48, inf  ;;  %v478_v57 = vmul.f32 %v826_v54, %v474_v55 }
 0x33c   : > { %503 = vmin.xlane.f32.xlu0 %v502_v50  ;;  %v507_v61 = vshll.u32 %v506_v56, 16 }
 0x33d   : > { %v461_v51 = vpop.permute.xlu0 %460 }
 0x33e   : > { %vm463_vm8 = vcmp.eq.s32.totalorder %v1066_v24, %v461_v51 }
 0x33f   : > { %v464_v52 = vsel %vm463_vm8, %v439_v25, 0.0 }
 0x340   : > { %465 = vadd.xlane.f32.xlu1 %v464_v52 }
 0x3c4   : > { %v489_v58 = vpop.xlane.xlu1 %488 }
 0x3c5   : > { %v490_v59 = vadd.f32 %v489_v58, %v478_v57  ;;  %v504_v60 = vpop.xlane.xlu0 %503 }
 0x3c6   : > { %v505_v62 = vcvt.f32.s32 %v504_v60 }
 0x3c7   : > { %491 = vst.msk [vmem:[#allocation4] sm:$0xff] %vm378_vm3, %v490_v59 }
 0x3c8   : > { %v508_v1 = vadd.s32 %v507_v61, %v505_v62 }
 0x3c9   : > { %v466_v2 = vpop.xlane.xlu1 %465 }
 0x3ca   : > { %v514_v3 = vsel %vm510_vm5, %v508_v1, %v513_v63  ;;  %v467_v4 = vadd.f32 %v466_v2, %v462_v0 }
 0x3cb   : > { %515 = vst.msk [vmem:[#allocation7] sm:$0xff] %vm378_vm3, %v514_v3 }
 0x3cc   : > { %469 = vst.msk [vmem:[#allocation5] sm:$0xff] %vm378_vm3, %v467_v4 }
 0x3ce   : > { %v520_v5 = vld [vmem:[#allocation4] sm:$0xff] }
 0x3cf   : > { %827 = vlog2.f32 %v520_v5 }
 0x3d2   : > { %v537_v6 = vld [vmem:[#allocation7] sm:$0xff] }
 0x3d3   : > { %539 = vperm.xlu1 %817, %v537_v6   ;;  %v524_v11 = vld [vmem:[#allocation5] sm:$0xff] }
 0x3dc   : > { %v828_v7 = vpop.eup %827 }
 0x3dd   : > { %v522_v8 = vmul.f32 0.6931472, %v828_v7 }
 0x3df   : > { %v523_v10 = vadd.f32 %v522_v8, %v519_v9 }
 0x3e1   : > { %v525_v12 = vsub.f32 %v523_v10, %v524_v11 }
 0x3e2   : > { %842 = shalt.err (!%p839_p5)
}
 0x3e3   : > { %s843_s18 = scalar_lea.hbm %s566_s10, 64  ;;  %s847_s8 = scalar_lea.hbm %s1165_s5, 128 }
 0x3e4   : > { %p844_p6 = scmp.ne.s32.totalorder %s566_s10, %s843_s18  ;;  %p848_p10 = scmp.lt.s32.totalorder %s566_s10, %s1165_s5 }
 0x3e5   : > { %p849_p11 = scmp.lt.s32.totalorder %s847_s8, %s843_s18 }
 0x3e6   : > { %p845_p7 = pnand %p844_p6, %p1023_p4 }
 0x3e7   : > { %p850_p12 = por %p849_p11, %p848_p10 }
 0x3e8   : > { %p846_p9 = pneg %p845_p7 }
 0x3ea   : > { %p851_p13 = pnand %p850_p12, %p846_p9 }
 0x3ec   : > { %854 = shalt.err (!%p851_p13)
}
 0x3ed   : > { %753 = dma.vmem_to_hbm [thread:$0]  (%p1023_p4), %s569_s23, 64, %s566_s10, %s547_s12   ;;  %528 = vperm.xlu0 %818, %v525_v12   ;;  %v531_v13 = vshrl.u32 %v445_v23, 7  ;;  %vm535_vm9 = vcmask 57344  }
 0x3ee   : > { %s739_s17 = sshll.u32 %s927_s27, 4  ;;  %s322_s19 = scalar_lea.vmem [#allocation10], %s1069_s16 }
 0x3ef   : > { %v532_v14 = vsub.s32 %v1066_v24, %v531_v13  ;;  %s584_s0 = sshll.u32 %s322_s19, 4  ;;  %s582_s21 = scalar_lea.hbm %s1167_s7, %s739_s17  ;;  %s585_s0 = int_to_ptr.vmem [resolvable:$true] %s584_s0 }
 0x3f0   : > { %s555_s23 = scalar_lea.sflag [#allocation11], %s1069_s16  ;;  %s855_s10 = scalar_lea.vmem %s585_s0, 16 }
 0x3f1   : > { %p856_p0 = scmp.ne.s32.totalorder %s585_s0, %s855_s10  ;;  %s942_s12 = smov [#allocation10]  }
 0x3f2   : > { %s859_s27 = sshll.u32 %s942_s12, 4  ;;  %s860_s27 = int_to_ptr.vmem [resolvable:$false] %s859_s27 }
 0x3f3   : > { %p857_p1 = pnand %p856_p0, %p1023_p4  ;;  %s861_s18 = scalar_lea.vmem %s860_s27, 32 }
 0x3f4   : > { %p862_p3 = scmp.lt.s32.totalorder %s585_s0, %s860_s27  ;;  %p863_p5 = scmp.lt.s32.totalorder %s861_s18, %s855_s10 }
 0x3f5   : > { %p858_p2 = pneg %p857_p1 }
 0x3f6   : > { %p864_p6 = por %p863_p5, %p862_p3 }
 0x3f8   : > { %p865_p7 = pnand %p864_p6, %p858_p2 }
 0x44e   : > { %v540_v15 = vpop.permute.xlu1 %539 }
 0x44f   : > { %v544_v16 = vrot.slane %v540_v15, %v532_v14 }
 0x451   : > { %545 = vst.msk [vmem:[%s322_s19] sm:$0x1] %vm535_vm9, %v544_v16 }
 0x452   : > { %868 = shalt.err (!%p865_p7)
}
 0x453   : > { %s869_s22 = scalar_lea.hbm %s582_s21, 16  ;;  %s873_s8 = scalar_lea.hbm %s1167_s7, 32 }
 0x454   : > { %p870_p9 = scmp.ne.s32.totalorder %s582_s21, %s869_s22  ;;  %p874_p12 = scmp.lt.s32.totalorder %s582_s21, %s1167_s7 }
 0x455   : > { %p875_p13 = scmp.lt.s32.totalorder %s873_s8, %s869_s22 }
 0x456   : > { %p871_p10 = pnand %p870_p9, %p1023_p4 }
 0x457   : > { %p876_p0 = por %p875_p13, %p874_p12 }
 0x458   : > { %p872_p11 = pneg %p871_p10 }
 0x45a   : > { %p877_p1 = pnand %p876_p0, %p872_p11 }
 0x45c   : > { %880 = shalt.err (!%p877_p1)
}
 0x45d   : > { %754 = dma.vmem_to_hbm [thread:$0]  (%p1023_p4), %s585_s0, 16, %s582_s21, %s555_s23  }
 0x45e   : > { %s336_s10 = scalar_lea.vmem %s1166_s6, %s1040_s15 }
 0x468   : > { %v529_v17 = vpop.permute.xlu0 %528 }
 0x469   : > { %v533_v18 = vrot.slane %v529_v17, %v532_v14 }
 0x46b   : > { %536 = vst.msk [vmem:[%s336_s10] sm:$0x1] %vm535_vm9, %v533_v18 }
 0x46c PF: > { %p764_p2 = scmp.ge.s32.totalorder %s935_s29, 2  ;;  %s596_s12 = sand.u32 1, %s915_s24  }
 0x46d   : > { %s597_s11 = scalar_lea.sflag [#allocation9], %s596_s12 }
 0x46e   : > { %p758_p3 = pnand %p764_p2, %p1030_p8 }
 0x470   : > { %p759_p5 = pneg %p758_p3 }
 0x472   : > { %906 = dma.done.wait (%p759_p5), %s597_s11, 64  }
 0x473   : > { %908 = vsyncadd (%p759_p5), %s597_s11, 4294967232  ;;  %s612_s0 = scalar_lea.sflag [#allocation11], %s596_s12 }
 0x474   : > { %910 = dma.done.wait (%p759_p5), %s612_s0, 16  }
 0x475   : > { %912 = vsyncadd (%p759_p5), %s612_s0, 4294967280  ;;  %s24_s29 = sadd.s32 1, %s935_s29   ;;  %s1174_s24 = smov %s919_s25 }
 0x476   : > { %p21_p4 = scmp.ge.s32.totalorder %s24_s29, 4   ;;  %s1175_s25 = smov %s923_s26 }
 0x477   : > { %s1176_s26 = smov %s1036_s14  ;;  %s1177_s27 = smov %s931_s28 }
 0x478   : > { %s1178_s28 = smov %s1180_s9  ;;  %23 = sbr.rel (!%p21_p4) target bundleno = 9 (0x9), region = 118 }
 0x47d   :  { %616 = vsyncpa [#allocation9], 1 }
 0x47e   :  { %618 = vsyncpa [#allocation9 + $0x1], 1 }
 0x47f   :  { %619 = vsyncpa [#allocation11], 1 }
 0x480   :  { %621 = vsyncpa [#allocation11 + $0x1], 1 }

// kernel: _lambda_.6
= control target key start
LH: loop header
LB: loop body
LE: loop exit
PB: predicated region body
PF: predicated region fallthrough
CT: control target
= control target key end

     0   :  { %s1709_s25 = smov 0   ;;  %s1910_s0 = inlined_call_operand.vmem [shape: bf16[2,8,32], index: 0, kind: input, shape index: {}]   ;;  %s1911_s1 = inlined_call_operand.vmem [shape: f32[1,32], index: 1, kind: input, shape index: {}]   ;;  %s1912_s2 = inlined_call_operand.vmem [shape: f32[1,32], index: 2, kind: input, shape index: {}]   ;;  %s1913_s3 = inlined_call_operand.vmem [shape: bf16[32,96], index: 3, kind: input, shape index: {}]   ;;  %s1914_s4 = inlined_call_operand.vmem [shape: f32[1,96], index: 4, kind: input, shape index: {}]   ;;  %s1915_s5 = inlined_call_operand.vmem [shape: bf16[32,32], index: 5, kind: input, shape index: {}]   ;;  %s1916_s6 = inlined_call_operand.vmem [shape: f32[1,32], index: 6, kind: input, shape index: {}]   ;;  %s1917_s7 = inlined_call_operand.vmem [shape: f32[1,32], index: 7, kind: input, shape index: {}]   ;;  %s1918_s8 = inlined_call_operand.vmem [shape: f32[1,32], index: 8, kind: input, shape index: {}]   ;;  %s1919_s9 = inlined_call_operand.vmem [shape: bf16[32,128], index: 9, kind: input, shape index: {}]   ;;  %s1920_s10 = inlined_call_operand.vmem [shape: f32[1,128], index: 10, kind: input, shape index: {}]   ;;  %s1921_s11 = inlined_call_operand.vmem [shape: bf16[128,32], index: 11, kind: input, shape index: {}]   ;;  %s1922_s12 = inlined_call_operand.vmem [shape: f32[1,32], index: 12, kind: input, shape index: {}]   ;;  %s1923_s13 = inlined_call_operand.vmem [shape: bf16[2,8,32], index: 13, kind: output, shape index: {}]  }
   0x1 LB: > { %s1391_s26 = sadd.s32 4294967295, %s1627_s25   ;;  %p1395_p0 = scmp.ge.s32.totalorder %s1627_s25, 1  ;;  %s1627_s25 = sphi %s1709_s25, %s23_s25  }
   0x2   : > { %p386_p1 = scmp.lt.s32.totalorder %s1627_s25, 3 }
   0x4   : > { %p387_p2 = pnand %p1395_p0, %p386_p1 }
   0x5   : > { %p428_p3 = scmp.lt.s32.totalorder (!%p387_p2), %s1391_s26, 1  ;;  %s1631_s24 = smov (!%p387_p2), 104  }
   0x6   : > { %390 = sbr.rel (%p387_p2) target bundleno = 2374 (0x946), region = 72  ;;  %s1632_s28 = smov (!%p387_p2), 120  }
   0x7   : > { %s1633_s29 = smov (!%p387_p2), 112   ;;  %s1635_s14 = smov (!%p387_p2), 64  }
   0x8   : > { %s1636_s19 = smov (!%p387_p2), 8   ;;  %s1637_s20 = smov (!%p387_p2), 16  }
   0x9   : > { %s1638_s21 = smov (!%p387_p2), 24  }
   0xb   : > { %s1925_s26 = smov (!%p428_p3, %s1391_s26), 1  ;;  %vm441_vm0 = vcmask 261120   ;;  %v1577_v8 = vld [vmem:[%s1913_s3 + $0x8] sm:$0xff]   ;;  %v1629_v9 = vmov 0.0   ;;  %vm1630_vm1 = vmmov 0   ;;  %v1578_v10 = vld [vmem:[%s1913_s3] sm:$0xff]   ;;  %v551_v44 = vlaneseq }
   0xc   : > { %s1396_s27 = sshll.u32 %s1925_s26, 2  ;;  %1467 = vmatprep.subr.bf16.mxu0 %v1629_v9  ;;  %1471 = vmatprep.mubr.msk.bf16.mxu0 %vm1630_vm1, %v1629_v9  ;;  %v1398_v15 = vld [vmem:[%s1911_s1] ss:$0 sm:$0xff]  ;;  %vm558_vm2 = vcmask 64512   ;;  %vm832_vm3 = vcmask 1043456   ;;  %vm1045_vm5 = vcmask 130048  }
   0xd   : > { %s431_s30 = scalar_lea.vmem %s1910_s0, %s1396_s27  ;;  %1468 = vmatpush3.bf16.msra.mxu0 %v1577_v8  ;;  %1487 = vmatprep.subr.bf16.mxu1 %v1629_v9  ;;  %v1399_v17 = vld [vmem:[%s1912_s2] ss:$0 sm:$0xff]  ;;  %v552_v45 = vshrl.u32 %v551_v44, 7  ;;  %v554_v46 = vand.u32 127, %v551_v44  ;;  %vm1047_vm6 = vcmask 195584   ;;  %vm1336_vm7 = vcmask 257024  }
   0xe   : > { %v437_v0 = vld [vmem:[%s431_s30] sm:$0xf]  ;;  %1469 = vmatprep.subr.bf16.mxu0 %v1629_v9  ;;  %1489 = vmatprep.mubr.msk.bf16.mxu1 %vm1630_vm1, %v1629_v9  ;;  %s1634_s30 = smov 96  }
   0xf   : > { %v1725_v1 = vunpack.c.l.bf16 %v437_v0  ;;  %v1400_v21 = vld [vmem:[%s1914_s4] ss:$0 sm:$0xff]  ;;  %vm756_vm4 = vcmp.le.s32.totalorder %v554_v46, %v552_v45 }
  0x11   : > { %v442_v2 = vsel %vm441_vm0, %v1725_v1, 0.0  ;;  %1470 = vmatpush3.bf16.msra.mxu0 %v1578_v10 }
  0x12   : > { %443 = vadd.xlane.f32.xlu0 %v442_v2  ;;  %1475 = vmatprep.subr.bf16.mxu0 %v1629_v9 }
  0x9b   : > { %v444_v3 = vpop.xlane.xlu0 %443 }
  0x9c   : > { %v446_v4 = vmul.f32 0.03125, %v444_v3 }
  0x9e   : > { %v447_v5 = vsub.f32 %v1725_v1, %v446_v4 }
  0xa0   : > { %v448_v6 = vmul.f32 %v447_v5, %v447_v5 }
  0xa2   : > { %v449_v7 = vsel %vm441_vm0, %v448_v6, 0.0 }
  0xa3   : > { %450 = vadd.xlane.f32.xlu0 %v449_v7 }
 0x12c   : > { %v451_v11 = vpop.xlane.xlu0 %450 }
 0x12d   : > { %v452_v12 = vmul.f32 0.03125, %v451_v11 }
 0x12f   : > { %v453_v13 = vadd.f32 1e-05, %v452_v12 }
 0x131   : > { %1591 = vrsqrt.f32 %v453_v13 }
 0x13e   : > { %v1592_v14 = vpop.eup %1591 }
 0x13f   : > { %v455_v16 = vmul.f32 %v1592_v14, %v447_v5 }
 0x141   : > { %v462_v18 = vmul.f32 %v1398_v15, %v455_v16 }
 0x143   : > { %v469_v19 = vadd.f32 %v1399_v17, %v462_v18 }
 0x145   : > { %v470_v20 = vpack.c.bf16 %v469_v19, %v469_v19 }
 0x147   : > { %1472 = vmatmul.mubr.msk.bf16.vlgmr.msra.gmra.mxu0 %vm441_vm0, %v470_v20 }
 0x148   : > { %1477 = vmatprep.mubr.msk.bf16.mxu0 %vm1630_vm1, %v1629_v9 }
 0x207   : > { %v531_v22 = vpop.f32.mrf.mxu0 }
 0x208   : > { %v532_v23 = vadd.f32 %v1400_v21, %v531_v22 }
 0x209   : > { %v1473_v24 = vpop.f32.mrf.mxu0 }
 0x20a   : > { %544 = vrot.lane.b32.xlu0 %v532_v23, %s1631_s24  ;;  %538 = vrot.lane.b32.xlu1 %v532_v23, %s1632_s28  ;;  %v547_v27 = vpack.c.bf16 %v532_v23, %v532_v23 }
 0x20b   : > { %v534_v25 = vpop.f32.mrf.mxu0 }
 0x20d   : > { %v1474_v26 = vpop.f32.mrf.mxu0 }
 0x20e   : > { %541 = vrot.lane.b32.xlu1 %v532_v23, %s1633_s29  ;;  %s435_s29 = scalar_lea.vmem %s1923_s13, %s1396_s27 }
 0x212   : > { %556 = vrot.lane.b32.xlu1 %v547_v27, %s1634_s30 }
 0x27c   : > { %v539_v28 = vpop.permute.xlu1 %538  ;;  %v545_v32 = vpop.permute.xlu0 %544 }
 0x27d   : > { %v1757_v29 = vpack.c.bf16 %v539_v28, %v539_v28  ;;  %v1763_v34 = vpack.c.bf16 %v545_v32, %v545_v32 }
 0x27f   : > { %606 = vrot.lane.b32.xlu1 %v1757_v29, %s1634_s30 }
 0x280   : > { %v542_v30 = vpop.permute.xlu1 %541 }
 0x281   : > { %v1760_v31 = vpack.c.bf16 %v542_v30, %v542_v30 }
 0x283   : > { %655 = vrot.lane.b32.xlu1 %v1760_v31, %s1634_s30 }
 0x284   : > { %v557_v33 = vpop.permute.xlu1 %556 }
 0x285   : > { %v563_v35 = vsel %vm558_vm2, %v557_v33, 0 }
 0x286   : > { %1476 = vmatpush3.bf16.xpose.msra.mxu0 %v563_v35 }
 0x287   : > { %704 = vrot.lane.b32.xlu1 %v1763_v34, %s1634_s30  ;;  %1481 = vmatprep.subr.bf16.mxu0 %v1629_v9 }
 0x28b   : > { %827 = vrot.lane.b32.xlu1 %v547_v27, %s1635_s14 }
 0x28d   : > { %1478 = vmatmul.mubr.msk.bf16.vlgmr.msra.gmra.mxu0 %vm558_vm2, %v547_v27 }
 0x28e   : > { %1483 = vmatprep.mubr.msk.bf16.mxu0 %vm1630_vm1, %v1629_v9 }
 0x2f1   : > { %v607_v36 = vpop.permute.xlu1 %606 }
 0x2f2   : > { %v612_v37 = vsel %vm558_vm2, %v607_v36, 0 }
 0x2f3   : > { %1482 = vmatpush3.bf16.xpose.msra.mxu0 %v612_v37 }
 0x2f4   : > { %1493 = vmatprep.subr.bf16.mxu0 %v1629_v9 }
 0x2f5   : > { %v656_v38 = vpop.permute.xlu1 %655 }
 0x2f6   : > { %v661_v39 = vsel %vm558_vm2, %v656_v38, 0 }
 0x2f7   : > { %1488 = vmatpush3.bf16.xpose.msra.mxu1 %v661_v39 }
 0x2f8   : > { %1499 = vmatprep.subr.bf16.mxu1 %v1629_v9 }
 0x2f9   : > { %v705_v40 = vpop.permute.xlu1 %704 }
 0x2fa   : > { %v710_v41 = vsel %vm558_vm2, %v705_v40, 0  ;;  %1484 = vmatmul.mubr.msk.bf16.vlgmr.msra.gmra.mxu0 %vm558_vm2, %v1757_v29 }
 0x2fb   : > { %1494 = vmatpush3.bf16.xpose.msra.mxu0 %v710_v41  ;;  %1495 = vmatprep.mubr.msk.bf16.mxu0 %vm1630_vm1, %v1629_v9 }
 0x2fc   : > { %1505 = vmatprep.subr.bf16.mxu0 %v1629_v9 }
 0x2fd   : > { %v828_v42 = vpop.permute.xlu1 %827 }
 0x2fe   : > { %v834_v43 = vsel %vm832_vm3, %v828_v42, 0  ;;  %1490 = vmatmul.mubr.msk.bf16.vlgmr.msra.gmra.mxu1 %vm558_vm2, %v1760_v31 }
 0x2ff   : > { %1500 = vmatpush3.bf16.msra.mxu1 %v834_v43  ;;  %1501 = vmatprep.mubr.msk.bf16.mxu1 %vm1630_vm1, %v1629_v9 }
 0x300   : > { %1511 = vmatprep.subr.bf16.mxu1 %v1629_v9 }
 0x302   : > { %1496 = vmatmul.mubr.msk.bf16.vlgmr.msra.gmra.mxu0 %vm558_vm2, %v1763_v34 }
 0x303   : > { %1507 = vmatprep.mubr.msk.bf16.mxu0 %vm1630_vm1, %v1629_v9 }
 0x34d   : > { %v599_v47 = vpop.f32.mrf.mxu0 }
 0x34e   : > { %v752_v48 = vmul.f32 0.35355338, %v599_v47 }
 0x34f   : > { %v1479_v49 = vpop.f32.mrf.mxu0 }
 0x350   : > { %v759_v50 = vsel %vm756_vm4, %v752_v48, -10000.0 }
 0x351   : > { %v602_v51 = vpop.f32.mrf.mxu0  ;;  %v763_v52 = vsel %vm558_vm2, %v759_v50, -inf }
 0x352   : > { %764 = vmax.xlane.f32.xlu1 %v763_v52 }
 0x353   : > { %v1480_v53 = vpop.f32.mrf.mxu0 }
 0x3ba   : > { %v648_v54 = vpop.f32.mrf.mxu0 }
 0x3bb   : > { %v753_v55 = vmul.f32 0.35355338, %v648_v54 }
 0x3bc   : > { %v1485_v56 = vpop.f32.mrf.mxu0 }
 0x3bd   : > { %v760_v57 = vsel %vm756_vm4, %v753_v55, -10000.0 }
 0x3be   : > { %v651_v58 = vpop.f32.mrf.mxu0  ;;  %v697_v59 = vpop.f32.mrf.mxu1  ;;  %v766_v60 = vsel %vm558_vm2, %v760_v57, -inf }
 0x3bf   : > { %v754_v61 = vmul.f32 0.35355338, %v697_v59  ;;  %767 = vmax.xlane.f32.xlu0 %v766_v60 }
 0x3c0   : > { %v1486_v62 = vpop.f32.mrf.mxu0  ;;  %v1491_v63 = vpop.f32.mrf.mxu1 }
 0x3c1   : > { %v761_v0 = vsel %vm756_vm4, %v754_v61, -10000.0 }
 0x3c2   : > { %v700_v2 = vpop.f32.mrf.mxu1  ;;  %v746_v3 = vpop.f32.mrf.mxu0  ;;  %v769_v4 = vsel %vm558_vm2, %v761_v0, -inf }
 0x3c3   : > { %v755_v5 = vmul.f32 0.35355338, %v746_v3  ;;  %770 = vmax.xlane.f32.xlu1 %v769_v4 }
 0x3c4   : > { %v1492_v6 = vpop.f32.mrf.mxu1  ;;  %v1497_v7 = vpop.f32.mrf.mxu0 }
 0x3c5   : > { %v762_v8 = vsel %vm756_vm4, %v755_v5, -10000.0 }
 0x3c6   : > { %v749_v10 = vpop.f32.mrf.mxu0  ;;  %v772_v11 = vsel %vm558_vm2, %v762_v8, -inf }
 0x3c7   : > { %773 = vmax.xlane.f32.xlu0 %v772_v11 }
 0x3c8   : > { %v1498_v12 = vpop.f32.mrf.mxu0 }
 0x3d4   : > { %924 = vrot.lane.b32.xlu1 %v1760_v31, %s1635_s14 }
 0x3d8   : > { %972 = vrot.lane.b32.xlu1 %v1763_v34, %s1635_s14 }
 0x3db   : > { %v765_v13 = vpop.xlane.xlu1 %764 }
 0x3dc   : > { %v775_v14 = vmax.f32 %v765_v13, -1e+30 }
 0x3dd   : > { %876 = vrot.lane.b32.xlu0 %v1757_v29, %s1635_s14 }
 0x3de   : > { %v791_v15 = vsub.f32 %v759_v50, %v775_v14  ;;  %v779_v47 = vsub.f32 -1e+30, %v775_v14 }
 0x3e0   : > { %v795_v16 = vmul.f32 1.442695, %v791_v15  ;;  %v783_v48 = vmul.f32 1.442695, %v779_v47 }
 0x3e2   : > { %1593 = vpow2.f32 %v795_v16  ;;  %v1579_v16 = vld [vmem:[%s1915_s5 + $0x8] sm:$0xff]  }
 0x3ef   : > { %v1594_v17 = vpop.eup %1593 }
 0x3f0   : > { %v823_v18 = vpack.c.bf16 %v1594_v17, %v1594_v17  ;;  %v807_v46 = vsel %vm558_vm2, %v1594_v17, 0.0  ;;  %v1580_v17 = vld [vmem:[%s1915_s5] sm:$0xff]  }
 0x3f2   : > { %1502 = vmatmul.mubr.msk.bf16.vlgmr.msra.gmra.mxu1 %vm558_vm2, %v823_v18 }
 0x3f3   : > { %1513 = vmatprep.mubr.msk.bf16.mxu1 %vm1630_vm1, %v1629_v9 }
 0x448   : > { %v768_v19 = vpop.xlane.xlu0 %767 }
 0x449   : > { %v776_v20 = vmax.f32 %v768_v19, -1e+30 }
 0x44b   : > { %v792_v21 = vsub.f32 %v760_v57, %v776_v20  ;;  %v780_v60 = vsub.f32 -1e+30, %v776_v20 }
 0x44c   : > { %v771_v22 = vpop.xlane.xlu1 %770 }
 0x44d   : > { %v797_v23 = vmul.f32 1.442695, %v792_v21  ;;  %v777_v24 = vmax.f32 %v771_v22, -1e+30  ;;  %v785_v61 = vmul.f32 1.442695, %v780_v60 }
 0x44f   : > { %v793_v25 = vsub.f32 %v761_v0, %v777_v24  ;;  %1595 = vpow2.f32 %v797_v23  ;;  %v781_v62 = vsub.f32 -1e+30, %v777_v24 }
 0x450   : > { %v925_v26 = vpop.permute.xlu1 %924  ;;  %v774_v27 = vpop.xlane.xlu0 %773 }
 0x451   : > { %v799_v28 = vmul.f32 1.442695, %v793_v25  ;;  %v930_v29 = vsel %vm832_vm3, %v925_v26, 0  ;;  %v778_v30 = vmax.f32 %v774_v27, -1e+30 }
 0x452   : > { %1512 = vmatpush3.bf16.msra.mxu1 %v930_v29  ;;  %v787_v63 = vmul.f32 1.442695, %v781_v62 }
 0x453   : > { %1523 = vmatprep.subr.bf16.mxu1 %v1629_v9  ;;  %1597 = vpow2.f32 %v799_v28  ;;  %v794_v31 = vsub.f32 %v762_v8, %v778_v30  ;;  %v782_v0 = vsub.f32 -1e+30, %v778_v30 }
 0x454   : > { %v877_v32 = vpop.permute.xlu0 %876  ;;  %v973_v36 = vpop.permute.xlu1 %972 }
 0x455   : > { %v882_v33 = vsel %vm832_vm3, %v877_v32, 0  ;;  %v801_v34 = vmul.f32 1.442695, %v794_v31  ;;  %v978_v39 = vsel %vm832_vm3, %v973_v36, 0  ;;  %v789_v2 = vmul.f32 1.442695, %v782_v0 }
 0x456   : > { %1506 = vmatpush3.bf16.msra.mxu0 %v882_v33  ;;  %v1416_v0 = vld [vmem:[%s1917_s7] ss:$0 sm:$0xff] }
 0x457   : > { %1517 = vmatprep.subr.bf16.mxu0 %v1629_v9  ;;  %1599 = vpow2.f32 %v801_v34 }
 0x458   : > { %1601 = vpow2.f32 %v783_v48 }
 0x45c   : > { %v1596_v35 = vpop.eup %1595 }
 0x45d   : > { %v810_v37 = vsel %vm558_vm2, %v1596_v35, 0.0  ;;  %v824_v38 = vpack.c.bf16 %v1596_v35, %v1596_v35 }
 0x45e   : > { %811 = vadd.xlane.f32.xlu0 %v810_v37 }
 0x45f   : > { %1508 = vmatmul.mubr.msk.bf16.vlgmr.msra.gmra.mxu0 %vm558_vm2, %v824_v38 }
 0x460   : > { %v1598_v40 = vpop.eup %1597  ;;  %1518 = vmatpush3.bf16.msra.mxu0 %v978_v39  ;;  %1519 = vmatprep.mubr.msk.bf16.mxu0 %vm1630_vm1, %v1629_v9 }
 0x461   : > { %v813_v41 = vsel %vm558_vm2, %v1598_v40, 0.0  ;;  %v825_v42 = vpack.c.bf16 %v1598_v40, %v1598_v40  ;;  %1531 = vmatprep.subr.bf16.mxu0 %v1629_v9 }
 0x462   : > { %814 = vadd.xlane.f32.xlu1 %v813_v41 }
 0x463   : > { %1514 = vmatmul.mubr.msk.bf16.vlgmr.msra.gmra.mxu1 %vm558_vm2, %v825_v42 }
 0x464   : > { %1527 = vmatprep.mubr.msk.bf16.mxu1 %vm1630_vm1, %v1629_v9  ;;  %v1600_v43 = vpop.eup %1599  ;;  %1524 = vmatpush3.bf16.msra.mxu1 %v1579_v16  ;;  %v1418_v16 = vld [vmem:[%s1920_s10] ss:$0 sm:$0xff] }
 0x465   : > { %v816_v44 = vsel %vm558_vm2, %v1600_v43, 0.0  ;;  %v826_v45 = vpack.c.bf16 %v1600_v43, %v1600_v43  ;;  %v1602_v49 = vpop.eup %1601  ;;  %1525 = vmatprep.subr.bf16.mxu1 %v1629_v9 }
 0x466   : > { %817 = vadd.xlane.f32.xlu0 %v816_v44  ;;  %v803_v50 = vmul.f32 0.0, %v1602_v49 }
 0x467   : > { %1520 = vmatmul.mubr.msk.bf16.vlgmr.msra.gmra.mxu0 %vm558_vm2, %v826_v45 }
 0x468   : > { %1535 = vmatprep.mubr.msk.bf16.mxu0 %vm1630_vm1, %v1629_v9  ;;  %1526 = vmatpush3.bf16.msra.mxu1 %v1580_v17 }
 0x469   : > { %1539 = vmatprep.subr.bf16.mxu1 %v1629_v9 }
 0x46a   : > { %808 = vadd.xlane.f32.xlu0 %v807_v46  ;;  %v1412_v46 = vld [vmem:[%s1916_s6] ss:$0 sm:$0xff] }
 0x4b2   : > { %v870_v51 = vpop.f32.mrf.mxu1 }
 0x4b3   : > { %v1020_v52 = vadd.f32 %v870_v51, %v803_v50 }
 0x4b4   : > { %v1503_v53 = vpop.f32.mrf.mxu1 }
 0x4b6   : > { %v873_v54 = vpop.f32.mrf.mxu1 }
 0x4b8   : > { %v1504_v55 = vpop.f32.mrf.mxu1 }
 0x4e7   : > { %v812_v56 = vpop.xlane.xlu0 %811 }
 0x4eb   : > { %v815_v10 = vpop.xlane.xlu1 %814 }
 0x4ef   : > { %v818_v57 = vpop.xlane.xlu0 %817 }
 0x4f3   : > { %v809_v58 = vpop.xlane.xlu0 %808 }
 0x4f4   : > { %v819_v59 = vadd.f32 %v809_v58, %v803_v50 }
 0x4f6   : > { %1603 = vrcp.f32 %v819_v59  ;;  %v1581_v59 = vld [vmem:[%s1919_s9 + $0x8] sm:$0xff]  }
 0x4f7   : > { %1605 = vpow2.f32 %v785_v61  ;;  %1532 = vmatpush3.bf16.msra.mxu0 %v1581_v59 }
 0x4f8   : > { %1607 = vpow2.f32 %v787_v63  ;;  %1533 = vmatprep.subr.bf16.mxu0 %v1629_v9 }
 0x4f9   : > { %1609 = vpow2.f32 %v789_v2 }
 0x503   : > { %v1604_v3 = vpop.eup %1603 }
 0x504   : > { %v1028_v4 = vmul.f32 %v1604_v3, %v1020_v52  ;;  %v1606_v5 = vpop.eup %1605  ;;  %v1417_v3 = vld [vmem:[%s1918_s8] ss:$0 sm:$0xff] }
 0x505   : > { %v804_v6 = vmul.f32 0.0, %v1606_v5  ;;  %v1608_v7 = vpop.eup %1607 }
 0x506   : > { %v805_v11 = vmul.f32 0.0, %v1608_v7  ;;  %v1610_v12 = vpop.eup %1609  ;;  %v1583_v7 = vld [vmem:[%s1921_s11 + $0x38] sm:$0xff]  }
 0x507   : > { %v820_v8 = vadd.f32 %v812_v56, %v804_v6  ;;  %v806_v14 = vmul.f32 0.0, %v1610_v12  ;;  %v1587_v12 = vld [vmem:[%s1921_s11 + $0x18] sm:$0xff]  }
 0x508   : > { %v821_v13 = vadd.f32 %v815_v10, %v805_v11  ;;  %v1585_v10 = vld [vmem:[%s1921_s11 + $0x28] sm:$0xff]  }
 0x509   : > { %1611 = vrcp.f32 %v820_v8  ;;  %v822_v15 = vadd.f32 %v818_v57, %v806_v14  ;;  %v1584_v8 = vld [vmem:[%s1921_s11 + $0x30] sm:$0xff]  }
 0x50a   : > { %1613 = vrcp.f32 %v821_v13  ;;  %v1588_v13 = vld [vmem:[%s1921_s11 + $0x10] sm:$0xff]  }
 0x50b   : > { %1615 = vrcp.f32 %v822_v15  ;;  %v1590_v15 = vld [vmem:[%s1921_s11] sm:$0xff]  }
 0x516   : > { %v1612_v20 = vpop.eup %1611 }
 0x517   : > { %v1614_v26 = vpop.eup %1613 }
 0x518   : > { %v1616_v34 = vpop.eup %1615 }
 0x51f   : > { %v918_v18 = vpop.f32.mrf.mxu0 }
 0x520   : > { %v1021_v19 = vadd.f32 %v918_v18, %v804_v6 }
 0x521   : > { %v1509_v21 = vpop.f32.mrf.mxu0 }
 0x522   : > { %v1029_v22 = vmul.f32 %v1612_v20, %v1021_v19 }
 0x523   : > { %v921_v23 = vpop.f32.mrf.mxu0  ;;  %v966_v24 = vpop.f32.mrf.mxu1 }
 0x524   : > { %v1022_v25 = vadd.f32 %v966_v24, %v805_v11  ;;  %1033 = vrot.lane.b32.xlu1 %v1029_v22, %s1636_s19  ;;  %v1586_v11 = vld [vmem:[%s1921_s11 + $0x20] sm:$0xff]  }
 0x525   : > { %v1510_v27 = vpop.f32.mrf.mxu0  ;;  %v1515_v28 = vpop.f32.mrf.mxu1 }
 0x526   : > { %v1030_v29 = vmul.f32 %v1614_v26, %v1022_v25 }
 0x527   : > { %v969_v30 = vpop.f32.mrf.mxu1  ;;  %v1014_v31 = vpop.f32.mrf.mxu0 }
 0x528   : > { %1037 = vrot.lane.b32.xlu0 %v1030_v29, %s1637_s20  ;;  %v1023_v32 = vadd.f32 %v1014_v31, %v806_v14  ;;  %v1589_v14 = vld [vmem:[%s1921_s11 + $0x8] sm:$0xff]   ;;  %v1422_v31 = vld [vmem:[%s1922_s12] ss:$0 sm:$0xff] }
 0x529   : > { %v1516_v33 = vpop.f32.mrf.mxu1  ;;  %v1521_v35 = vpop.f32.mrf.mxu0 }
 0x52a   : > { %v1031_v36 = vmul.f32 %v1616_v34, %v1023_v32 }
 0x52b   : > { %v1017_v37 = vpop.f32.mrf.mxu0 }
 0x52c   : > { %1041 = vrot.lane.b32.xlu1 %v1031_v36, %s1638_s21 }
 0x52d   : > { %v1522_v38 = vpop.f32.mrf.mxu0 }
 0x596   : > { %v1034_v39 = vpop.permute.xlu1 %1033 }
 0x597   : > { %v1044_v41 = vsel %vm558_vm2, %v1028_v4, %v1034_v39 }
 0x59a   : > { %v1038_v40 = vpop.permute.xlu0 %1037 }
 0x59b   : > { %v1046_v42 = vsel %vm1045_vm5, %v1044_v41, %v1038_v40 }
 0x59e   : > { %v1042_v43 = vpop.permute.xlu1 %1041 }
 0x59f   : > { %v1048_v44 = vsel %vm1047_vm6, %v1046_v42, %v1042_v43 }
 0x5a0   : > { %v1049_v45 = vpack.c.bf16 %v1048_v44, %v1048_v44 }
 0x5a2   : > { %1528 = vmatmul.mubr.msk.bf16.vlgmr.msra.gmra.mxu1 %vm441_vm0, %v1049_v45 }
 0x5a3   : > { %1555 = vmatprep.mubr.msk.bf16.mxu1 %vm1630_vm1, %v1629_v9  ;;  %1540 = vmatpush3.bf16.msra.mxu1 %v1583_v7 }
 0x5a4   : > { %1541 = vmatprep.subr.bf16.mxu1 %v1629_v9 }
 0x5a7   : > { %1542 = vmatpush3.bf16.msra.mxu1 %v1584_v8 }
 0x5a8   : > { %1543 = vmatprep.subr.bf16.mxu1 %v1629_v9 }
 0x5ab   : > { %1544 = vmatpush3.bf16.msra.mxu1 %v1585_v10 }
 0x5ac   : > { %1545 = vmatprep.subr.bf16.mxu1 %v1629_v9 }
 0x5af   : > { %1546 = vmatpush3.bf16.msra.mxu1 %v1586_v11 }
 0x5b0   : > { %1547 = vmatprep.subr.bf16.mxu1 %v1629_v9 }
 0x5b3   : > { %1548 = vmatpush3.bf16.msra.mxu1 %v1587_v12 }
 0x5b4   : > { %1549 = vmatprep.subr.bf16.mxu1 %v1629_v9 }
 0x5b7   : > { %1550 = vmatpush3.bf16.msra.mxu1 %v1588_v13 }
 0x5b8   : > { %1551 = vmatprep.subr.bf16.mxu1 %v1629_v9 }
 0x5bb   : > { %1552 = vmatpush3.bf16.msra.mxu1 %v1589_v14 }
 0x5bc   : > { %1553 = vmatprep.subr.bf16.mxu1 %v1629_v9 }
 0x5bf   : > { %1554 = vmatpush3.bf16.msra.mxu1 %v1590_v15 }
 0x662   : > { %v1110_v47 = vpop.f32.mrf.mxu1 }
 0x663   : > { %v1111_v48 = vadd.f32 %v1412_v46, %v1110_v47 }
 0x664   : > { %v1529_v49 = vpop.f32.mrf.mxu1 }
 0x665   : > { %v1844_v50 = vadd.f32 %v1111_v48, %v1725_v1  ;;  %v1582_v1 = vld [vmem:[%s1919_s9] sm:$0xff]  }
 0x666   : > { %v1113_v51 = vpop.f32.mrf.mxu1  ;;  %1534 = vmatpush3.bf16.msra.mxu0 %v1582_v1 }
 0x667   : > { %v1119_v52 = vsel %vm441_vm0, %v1844_v50, 0.0 }
 0x668   : > { %1120 = vadd.xlane.f32.xlu1 %v1119_v52  ;;  %v1530_v53 = vpop.f32.mrf.mxu1 }
 0x6f1   : > { %v1121_v54 = vpop.xlane.xlu1 %1120 }
 0x6f2   : > { %v1122_v55 = vmul.f32 0.03125, %v1121_v54 }
 0x6f4   : > { %v1123_v56 = vsub.f32 %v1844_v50, %v1122_v55 }
 0x6f6   : > { %v1124_v57 = vmul.f32 %v1123_v56, %v1123_v56 }
 0x6f8   : > { %v1125_v58 = vsel %vm441_vm0, %v1124_v57, 0.0 }
 0x6f9   : > { %1126 = vadd.xlane.f32.xlu0 %v1125_v58 }
 0x782   : > { %v1127_v60 = vpop.xlane.xlu0 %1126 }
 0x783   : > { %v1128_v61 = vmul.f32 0.03125, %v1127_v60 }
 0x785   : > { %v1129_v62 = vadd.f32 1e-05, %v1128_v61 }
 0x787   : > { %1617 = vrsqrt.f32 %v1129_v62 }
 0x794   : > { %v1618_v63 = vpop.eup %1617 }
 0x795   : > { %v1131_v2 = vmul.f32 %v1618_v63, %v1123_v56 }
 0x797   : > { %v1138_v4 = vmul.f32 %v1416_v0, %v1131_v2 }
 0x799   : > { %v1145_v5 = vadd.f32 %v1417_v3, %v1138_v4 }
 0x79b   : > { %v1146_v6 = vpack.c.bf16 %v1145_v5, %v1145_v5 }
 0x79d   : > { %1536 = vmatmul.mubr.msk.bf16.vlgmr.msra.gmra.mxu0 %vm441_vm0, %v1146_v6 }
 0x85d   : > { %v1207_v17 = vpop.f32.mrf.mxu0 }
 0x85e   : > { %v1208_v18 = vadd.f32 %v1418_v16, %v1207_v17 }
 0x85f   : > { %v1537_v19 = vpop.f32.mrf.mxu0 }
 0x860   : > { %v1214_v20 = vmul.f32 0.044715, %v1208_v18  ;;  %v1213_v28 = vmul.f32 0.5, %v1208_v18 }
 0x861   : > { %v1210_v21 = vpop.f32.mrf.mxu0 }
 0x862   : > { %v1215_v22 = vmul.f32 %v1214_v20, %v1208_v18 }
 0x863   : > { %v1538_v23 = vpop.f32.mrf.mxu0 }
 0x864   : > { %v1216_v24 = vmul.f32 %v1215_v22, %v1208_v18 }
 0x866   : > { %v1217_v25 = vadd.f32 %v1216_v24, %v1208_v18 }
 0x868   : > { %v1218_v26 = vmul.f32 0.7978846, %v1217_v25 }
 0x86a   : > { %1619 = vtanh.f32 %v1218_v26 }
 0x877   : > { %v1620_v27 = vpop.eup %1619 }
 0x878   : > { %v1220_v9 = vadd.f32 1.0, %v1620_v27 }
 0x87a   : > { %v1221_v29 = vmul.f32 %v1220_v9, %v1213_v28 }
 0x87c   : > { %v1222_v30 = vpack.c.bf16 %v1221_v29, %v1221_v29 }
 0x87e   : > { %1556 = vmatmul.mubr.bf16.vlgmr.msra.gmra.mxu1 %v1222_v30 }
 0x93e   : > { %v1328_v32 = vpop.f32.mrf.mxu1 }
 0x93f   : > { %v1329_v33 = vadd.f32 %v1422_v31, %v1328_v32 }
 0x940   : > { %v1557_v34 = vpop.f32.mrf.mxu1 }
 0x941   : > { %v1334_v35 = vadd.f32 %v1329_v33, %v1844_v50 }
 0x942   : > { %v1331_v36 = vpop.f32.mrf.mxu1 }
 0x943   : > { %v1335_v37 = vpack.c.bf16 %v1334_v35, %v1334_v35 }
 0x944   : > { %v1558_v38 = vpop.f32.mrf.mxu1 }
 0x945   : > { %1337 = vst.msk [vmem:[%s435_s29] sm:$0xf] %vm1336_vm7, %v1335_v37 }
 0x946 PF: > { %s23_s25 = sadd.s32 1, %s1627_s25  }
 0x947   : > { %p20_p4 = scmp.ge.s32.totalorder %s23_s25, 4  }
 0x949   :  { %22 = sbr.rel (!%p20_p4) target bundleno = 1 (0x1), region = 102 }

</bundles_post_ra>
